<compile_context>
chip_gen: v5e
topology: v5e:2x2
jax: 0.10.0
libtpu: 0.0.40
codegen_flags: <defaults>
</compile_context>

<pallas_src>
import jax
import jax.numpy as jnp
from jax import lax
from jax.experimental import pallas as pl
from jax.experimental.pallas import tpu as pltpu

# ---------------- config (small, synthetic) ----------------
PAD_ID = 1
B, S = 2, 8          # batch, sequence
V = 64               # vocab size
H = 32               # hidden size
NH = 4               # attention heads
DH = H // NH
F = 64               # FFN size
L = 2                # encoder layers
C = 2                # num labels
EPS = 1e-5
T = B * S
QKV_W = 128          # fused q|k|v column width, padded 3*H=96 -> 128 (lane-dense)


def _layer_norm(x, g, b):
    mu = jnp.mean(x, axis=-1, keepdims=True)
    var = jnp.mean((x - mu) ** 2, axis=-1, keepdims=True)
    return (x - mu) * lax.rsqrt(var + EPS) * g + b


def _gelu(x):
    # tanh approximation of GELU (f32 vector math)
    return 0.5 * x * (1.0 + jnp.tanh(0.7978845608028654 * (x + 0.044715 * x * x * x)))


def _split_heads(y):
    """[T, H] (f32) -> [NH*B, S, DH] bf16, head-major on the batch axis.

    Only static lane slices + leading-dim reshapes + axis-0 concat (all cheap
    and guaranteed to lower); no 4-D transposes.
    """
    parts = [y[:, n * DH:(n + 1) * DH].reshape(B, S, DH) for n in range(NH)]
    return jnp.concatenate(parts, axis=0).astype(jnp.bfloat16)


def _merge_heads(ctx):
    """[NH*B, S, DH] (f32) -> [T, H] with head-major lane layout."""
    c = ctx.reshape(NH, T, DH)
    return jnp.concatenate([c[n] for n in range(NH)], axis=-1)


def plbart_defect_kernel(
    ids_ref, labels_ref, tok_emb_ref, pos_emb_ref,
    wqkv_ref, wo_ref, w1_ref, w2_ref, lvecs_ref,
    wd_ref, bd_ref, wc_ref, bc_ref,
    prob_ref, loss_ref,
):
    ids = ids_ref[...]                                    # [B, S] int32
    mask_f = (ids != PAD_ID).astype(jnp.float32)          # [B, S]
    scale = jnp.float32(1.0 / (DH ** 0.5))

    # -------- embeddings: one-hot matmul (V tiny) + learned positions --------
    vocab_iota = lax.broadcasted_iota(jnp.int32, (B, S, V), 2)
    onehot = (vocab_iota == ids[:, :, None]).astype(jnp.bfloat16)      # [B,S,V]
    emb = jnp.dot(onehot.reshape(T, V), tok_emb_ref[...],
                  preferred_element_type=jnp.float32)                  # [T,H]
    pos = jnp.broadcast_to(pos_emb_ref[...][None], (B, S, H)).reshape(T, H)
    x = emb + pos                                                      # [T,H] f32

    # -------- additive attention-mask bias, computed exactly once --------
    bias = (mask_f - 1.0) * jnp.float32(1e9)                           # [B,S]
    bias3 = jnp.broadcast_to(bias[None, :, None, :],
                             (NH, B, 1, S)).reshape(NH * B, 1, S)      # [NH*B,1,S]

    # -------- encoder layers (unrolled; all stacked weights resident) --------
    for l in range(L):
        wqkv = wqkv_ref[l]                 # [H, 128] bf16 (cols: q | k | v | 0-pad)
        wo = wo_ref[l]                     # [H, H] bf16
        w1 = w1_ref[l]                     # [H, F] bf16
        w2 = w2_ref[l]                     # [F, H] bf16
        vec = lvecs_ref[l]                 # [8, 128] f32 packed per-layer vectors
        bqkv = vec[0:1, :]                 # [1, 128]
        bo = vec[1:2, :H]
        g1 = vec[2:3, :H]
        be1 = vec[3:4, :H]
        b1 = vec[4:5, :F]
        b2 = vec[5:6, :H]
        g2 = vec[6:7, :H]
        be2 = vec[7:8, :H]

        xb = x.astype(jnp.bfloat16)

        # fused QKV projection: one lane-dense [T,H] x [H,128] MXU matmul
        qkv = jnp.dot(xb, wqkv, preferred_element_type=jnp.float32) + bqkv  # [T,128]
        q = _split_heads(qkv[:, 0 * H:1 * H])                               # [NH*B,S,DH]
        k = _split_heads(qkv[:, 1 * H:2 * H])
        v = _split_heads(qkv[:, 2 * H:3 * H])

        # attention: single-batch-dim einsums over (head*batch)
        s = jnp.einsum('bqd,bkd->bqk', q, k,
                       preferred_element_type=jnp.float32) * scale + bias3  # [NH*B,S,S]
        s = s - jnp.max(s, axis=-1, keepdims=True)
        p = jnp.exp(s)
        p = p * pl.reciprocal(jnp.sum(p, axis=-1, keepdims=True), approx=True)
        ctx = jnp.einsum('bqk,bkd->bqd', p.astype(jnp.bfloat16), v,
                         preferred_element_type=jnp.float32)                # [NH*B,S,DH]

        # output projection: single [T,H] x [H,H] matmul over merged heads
        attn = jnp.dot(_merge_heads(ctx).astype(jnp.bfloat16), wo,
                       preferred_element_type=jnp.float32) + bo             # [T,H]
        x = _layer_norm(x + attn, g1, be1)

        # feed-forward
        h1 = _gelu(jnp.dot(x.astype(jnp.bfloat16), w1,
                           preferred_element_type=jnp.float32) + b1)
        ffn = jnp.dot(h1.astype(jnp.bfloat16), w2,
                      preferred_element_type=jnp.float32) + b2
        x = _layer_norm(x + ffn, g2, be2)

    # -------- pool last non-pad token (one-hot matmul), head, softmax, CE ----
    n_tok = jnp.sum(mask_f, axis=1, keepdims=True)                          # [B,1]
    # match torch[-1] behavior for an all-pad row: pick the last position
    last = jnp.where(n_tok > 0, n_tok - 1.0, jnp.float32(S - 1)).astype(jnp.int32)
    row = lax.broadcasted_iota(jnp.int32, (B, 1), 0)
    flat_last = row * S + last                                              # [B,1]
    tok_iota = lax.broadcasted_iota(jnp.int32, (B, T), 1)
    onehot_last = (tok_iota == flat_last).astype(jnp.bfloat16)              # [B,T]
    pooled = jnp.dot(onehot_last, x.astype(jnp.bfloat16),
                     preferred_element_type=jnp.float32)                    # [B,H]

    d = jnp.tanh(jnp.dot(pooled.astype(jnp.bfloat16), wd_ref[...],
                         preferred_element_type=jnp.float32) + bd_ref[...])
    logits = jnp.dot(d.astype(jnp.bfloat16), wc_ref[...],
                     preferred_element_type=jnp.float32) + bc_ref[...]      # [B,C]

    # dropout(p) in eval mode is the identity.

    # exact f32 softmax / cross-entropy (runs once on a tiny [B,C] tile)
    z = logits - jnp.max(logits, axis=-1, keepdims=True)
    ez = jnp.exp(z)
    denom = jnp.sum(ez, axis=-1, keepdims=True)
    prob_ref[...] = ez / denom

    logp = z - jnp.log(denom)
    cls_iota = lax.broadcasted_iota(jnp.int32, (B, C), 1)
    onehot_lab = (cls_iota == labels_ref[...]).astype(jnp.float32)
    loss_ref[...] = -jnp.sum(onehot_lab * logp, axis=(0, 1),
                             keepdims=True) * jnp.float32(1.0 / B)


def plbart_defect_forward(input_ids, labels, params):
    inputs = (input_ids, labels, params["tok_emb"], params["pos_emb"],
              params["wqkv"], params["wo"], params["w1"], params["w2"],
              params["lvecs"], params["wd"], params["bd"], params["wc"],
              params["bc"])
    # No grid: the whole problem fits comfortably in VMEM, so every operand is
    # resident and the body runs once (no per-grid-step / per-DMA overhead).
    prob, loss = pl.pallas_call(
        plbart_defect_kernel,
        out_shape=(jax.ShapeDtypeStruct((B, C), jnp.float32),
                   jax.ShapeDtypeStruct((1, 1), jnp.float32)),
        compiler_params=pltpu.CompilerParams(vmem_limit_bytes=32 * 1024 * 1024),
    )(*inputs)
    return loss[0, 0], prob


def make_params(key):
    ks = jax.random.split(key, 10)
    init = lambda k, shp: (0.02 * jax.random.normal(k, shp)).astype(jnp.float32)

    wq = init(ks[0], (L, H, H))
    wk = init(ks[1], (L, H, H))
    wv = init(ks[2], (L, H, H))
    # fused QKV weight, lane-padded to 128 output columns: [L, H, 128]
    wqkv = jnp.concatenate(
        [wq, wk, wv, jnp.zeros((L, H, QKV_W - 3 * H), jnp.float32)], axis=-1)

    # packed per-layer vectors: one [L, 8, 128] slab
    #   row 0: bqkv (96 valid)   row 1: bo   row 2: ln1 gamma  row 3: ln1 beta
    #   row 4: b1 (64 valid)     row 5: b2   row 6: ln2 gamma  row 7: ln2 beta
    def _pad_row(v):
        return jnp.pad(v, ((0, 0), (0, 128 - v.shape[-1])))

    rows = [
        jnp.zeros((L, 3 * H), jnp.float32),   # bqkv
        jnp.zeros((L, H), jnp.float32),       # bo
        jnp.ones((L, H), jnp.float32),        # ln1 gamma
        jnp.zeros((L, H), jnp.float32),       # ln1 beta
        jnp.zeros((L, F), jnp.float32),       # b1
        jnp.zeros((L, H), jnp.float32),       # b2
        jnp.ones((L, H), jnp.float32),        # ln2 gamma
        jnp.zeros((L, H), jnp.float32),       # ln2 beta
    ]
    lvecs = jnp.stack([_pad_row(r) for r in rows], axis=1)   # [L, 8, 128]

    return dict(
        tok_emb=init(ks[3], (V, H)).astype(jnp.bfloat16),
        pos_emb=init(ks[4], (S, H)),
        wqkv=wqkv.astype(jnp.bfloat16),
        wo=init(ks[5], (L, H, H)).astype(jnp.bfloat16),
        w1=init(ks[6], (L, H, F)).astype(jnp.bfloat16),
        w2=init(ks[7], (L, F, H)).astype(jnp.bfloat16),
        lvecs=lvecs,
        wd=init(ks[8], (H, H)).astype(jnp.bfloat16),
        bd=jnp.zeros((1, H), jnp.float32),
        wc=init(ks[9], (H, C)).astype(jnp.bfloat16),
        bc=jnp.zeros((1, C), jnp.float32),
    )


if __name__ == "__main__":
    key = jax.random.PRNGKey(0)
    k_par, k_tok = jax.random.split(key)
    params = make_params(k_par)

    # input_ids: random non-pad tokens then pad to length S (right padding)
    lengths = [6, 4]
    tok = jax.random.randint(k_tok, (B, S), 2, V, dtype=jnp.int32)
    pos = jnp.arange(S, dtype=jnp.int32)[None, :]
    lens = jnp.asarray(lengths, dtype=jnp.int32)[:, None]
    input_ids = jnp.where(pos < lens, tok, jnp.int32(PAD_ID))        # [B,S]
    labels = jnp.asarray([[0], [1]], dtype=jnp.int32)                # [B,1]

    loss, prob = plbart_defect_forward(input_ids, labels, params)
    jax.block_until_ready((loss, prob))
    print("KERNEL_OK")
</pallas_src>

<mosaic_0001>
module attributes {stable_mosaic.version = 11 : i64} {
  func.func @plbart_defect_kernel(%arg0: memref<2x8xi32, #tpu.memory_space<vmem>>, %arg1: memref<2x1xi32, #tpu.memory_space<vmem>>, %arg2: memref<64x32xbf16, #tpu.memory_space<vmem>>, %arg3: memref<8x32xf32, #tpu.memory_space<vmem>>, %arg4: memref<2x32x128xbf16, #tpu.memory_space<vmem>>, %arg5: memref<2x32x32xbf16, #tpu.memory_space<vmem>>, %arg6: memref<2x32x64xbf16, #tpu.memory_space<vmem>>, %arg7: memref<2x64x32xbf16, #tpu.memory_space<vmem>>, %arg8: memref<2x8x128xf32, #tpu.memory_space<vmem>>, %arg9: memref<32x32xbf16, #tpu.memory_space<vmem>>, %arg10: memref<1x32xf32, #tpu.memory_space<vmem>>, %arg11: memref<32x2xbf16, #tpu.memory_space<vmem>>, %arg12: memref<1x2xf32, #tpu.memory_space<vmem>>, %arg13: memref<2x2xf32, #tpu.memory_space<vmem>>, %arg14: memref<1x1xf32, #tpu.memory_space<vmem>>) attributes {dimension_semantics = [], scalar_prefetch = 0 : i64, scratch_operands = 0 : i64, tpu.core_type = #tpu.core_type<tc>} {
    %c0 = arith.constant 0 : index
    %c0_0 = arith.constant 0 : index
    %0 = vector.load %arg0[%c0, %c0_0] : memref<2x8xi32, #tpu.memory_space<vmem>>, vector<2x8xi32>
    %c1_i32 = arith.constant 1 : i32
    %1 = vector.broadcast %c1_i32 : i32 to vector<2x8xi32>
    %2 = arith.cmpi ne, %0, %1 : vector<2x8xi32>
    %3 = arith.extui %2 : vector<2x8xi1> to vector<2x8xi32>
    %4 = arith.sitofp %3 : vector<2x8xi32> to vector<2x8xf32>
    %5 = tpu.iota {dimensions = array<i32: 2>} : vector<2x8x64xi32>
    %6 = vector.shape_cast %0 : vector<2x8xi32> to vector<2x8x1xi32>
    %7 = vector.broadcast %6 : vector<2x8x1xi32> to vector<2x8x64xi32>
    %8 = arith.cmpi eq, %5, %7 : vector<2x8x64xi32>
    %9 = arith.extui %8 : vector<2x8x64xi1> to vector<2x8x64xi32>
    %10 = arith.sitofp %9 : vector<2x8x64xi32> to vector<2x8x64xf32>
    %11 = arith.truncf %10 : vector<2x8x64xf32> to vector<2x8x64xbf16>
    %12 = vector.shape_cast %11 : vector<2x8x64xbf16> to vector<16x64xbf16>
    %c0_1 = arith.constant 0 : index
    %c0_2 = arith.constant 0 : index
    %13 = vector.load %arg2[%c0_1, %c0_2] : memref<64x32xbf16, #tpu.memory_space<vmem>>, vector<64x32xbf16>
    %cst = arith.constant dense<0.000000e+00> : vector<16x32xf32>
    %14 = tpu.matmul %12, %13, %cst {dimension_numbers = #tpu.dot_dimension_numbers<[1], [0], [0], [1], [0, 0, 1, 1], [], []>} : vector<16x64xbf16>, vector<64x32xbf16>, vector<16x32xf32> -> vector<16x32xf32>
    %c0_3 = arith.constant 0 : index
    %c0_4 = arith.constant 0 : index
    %15 = vector.load %arg3[%c0_3, %c0_4] : memref<8x32xf32, #tpu.memory_space<vmem>>, vector<8x32xf32>
    %16 = vector.shape_cast %15 : vector<8x32xf32> to vector<1x8x32xf32>
    %17 = vector.shape_cast %16 : vector<1x8x32xf32> to vector<1x8x32xf32>
    %18 = vector.broadcast %17 : vector<1x8x32xf32> to vector<2x8x32xf32>
    %19 = vector.shape_cast %18 : vector<2x8x32xf32> to vector<16x32xf32>
    %20 = arith.addf %14, %19 : vector<16x32xf32>
    %cst_5 = arith.constant 1.000000e+00 : f32
    %21 = vector.broadcast %cst_5 : f32 to vector<2x8xf32>
    %22 = arith.subf %4, %21 : vector<2x8xf32>
    %cst_6 = arith.constant 1.000000e+09 : f32
    %23 = vector.broadcast %cst_6 : f32 to vector<2x8xf32>
    %24 = arith.mulf %22, %23 : vector<2x8xf32>
    %25 = vector.shape_cast %24 : vector<2x8xf32> to vector<1x2x1x8xf32>
    %26 = vector.shape_cast %25 : vector<1x2x1x8xf32> to vector<1x2x1x8xf32>
    %27 = vector.broadcast %26 : vector<1x2x1x8xf32> to vector<4x2x1x8xf32>
    %28 = vector.shape_cast %27 : vector<4x2x1x8xf32> to vector<8x1x8xf32>
    %c0_7 = arith.constant 0 : index
    %c0_8 = arith.constant 0 : index
    %c0_9 = arith.constant 0 : index
    %29 = vector.load %arg4[%c0_7, %c0_8, %c0_9] : memref<2x32x128xbf16, #tpu.memory_space<vmem>>, vector<1x32x128xbf16>
    %30 = vector.shape_cast %29 : vector<1x32x128xbf16> to vector<32x128xbf16>
    %c0_10 = arith.constant 0 : index
    %c0_11 = arith.constant 0 : index
    %c0_12 = arith.constant 0 : index
    %31 = vector.load %arg5[%c0_10, %c0_11, %c0_12] : memref<2x32x32xbf16, #tpu.memory_space<vmem>>, vector<1x32x32xbf16>
    %32 = vector.shape_cast %31 : vector<1x32x32xbf16> to vector<32x32xbf16>
    %c0_13 = arith.constant 0 : index
    %c0_14 = arith.constant 0 : index
    %c0_15 = arith.constant 0 : index
    %33 = vector.load %arg6[%c0_13, %c0_14, %c0_15] : memref<2x32x64xbf16, #tpu.memory_space<vmem>>, vector<1x32x64xbf16>
    %34 = vector.shape_cast %33 : vector<1x32x64xbf16> to vector<32x64xbf16>
    %c0_16 = arith.constant 0 : index
    %c0_17 = arith.constant 0 : index
    %c0_18 = arith.constant 0 : index
    %35 = vector.load %arg7[%c0_16, %c0_17, %c0_18] : memref<2x64x32xbf16, #tpu.memory_space<vmem>>, vector<1x64x32xbf16>
    %36 = vector.shape_cast %35 : vector<1x64x32xbf16> to vector<64x32xbf16>
    %c0_19 = arith.constant 0 : index
    %c0_20 = arith.constant 0 : index
    %c0_21 = arith.constant 0 : index
    %37 = vector.load %arg8[%c0_19, %c0_20, %c0_21] : memref<2x8x128xf32, #tpu.memory_space<vmem>>, vector<1x8x128xf32>
    %38 = vector.shape_cast %37 : vector<1x8x128xf32> to vector<8x128xf32>
    %39 = vector.extract_strided_slice %38 {offsets = [0, 0], sizes = [1, 128], strides = [1, 1]} : vector<8x128xf32> to vector<1x128xf32>
    %40 = vector.extract_strided_slice %38 {offsets = [1, 0], sizes = [1, 32], strides = [1, 1]} : vector<8x128xf32> to vector<1x32xf32>
    %41 = vector.extract_strided_slice %38 {offsets = [2, 0], sizes = [1, 32], strides = [1, 1]} : vector<8x128xf32> to vector<1x32xf32>
    %42 = vector.extract_strided_slice %38 {offsets = [3, 0], sizes = [1, 32], strides = [1, 1]} : vector<8x128xf32> to vector<1x32xf32>
    %43 = vector.extract_strided_slice %38 {offsets = [4, 0], sizes = [1, 64], strides = [1, 1]} : vector<8x128xf32> to vector<1x64xf32>
    %44 = vector.extract_strided_slice %38 {offsets = [5, 0], sizes = [1, 32], strides = [1, 1]} : vector<8x128xf32> to vector<1x32xf32>
    %45 = vector.extract_strided_slice %38 {offsets = [6, 0], sizes = [1, 32], strides = [1, 1]} : vector<8x128xf32> to vector<1x32xf32>
    %46 = vector.extract_strided_slice %38 {offsets = [7, 0], sizes = [1, 32], strides = [1, 1]} : vector<8x128xf32> to vector<1x32xf32>
    %47 = arith.truncf %20 : vector<16x32xf32> to vector<16x32xbf16>
    %cst_22 = arith.constant dense<0.000000e+00> : vector<16x128xf32>
    %48 = tpu.matmul %47, %30, %cst_22 {dimension_numbers = #tpu.dot_dimension_numbers<[1], [0], [0], [1], [0, 0, 1, 1], [], []>} : vector<16x32xbf16>, vector<32x128xbf16>, vector<16x128xf32> -> vector<16x128xf32>
    %49 = vector.broadcast %39 : vector<1x128xf32> to vector<16x128xf32>
    %50 = arith.addf %48, %49 : vector<16x128xf32>
    %51 = vector.extract_strided_slice %50 {offsets = [0, 0], sizes = [16, 32], strides = [1, 1]} : vector<16x128xf32> to vector<16x32xf32>
    %52 = vector.extract_strided_slice %51 {offsets = [0, 0], sizes = [16, 8], strides = [1, 1]} : vector<16x32xf32> to vector<16x8xf32>
    %53 = vector.shape_cast %52 : vector<16x8xf32> to vector<2x8x8xf32>
    %54 = vector.extract_strided_slice %51 {offsets = [0, 8], sizes = [16, 8], strides = [1, 1]} : vector<16x32xf32> to vector<16x8xf32>
    %55 = vector.shape_cast %54 : vector<16x8xf32> to vector<2x8x8xf32>
    %56 = vector.extract_strided_slice %51 {offsets = [0, 16], sizes = [16, 8], strides = [1, 1]} : vector<16x32xf32> to vector<16x8xf32>
    %57 = vector.shape_cast %56 : vector<16x8xf32> to vector<2x8x8xf32>
    %58 = vector.extract_strided_slice %51 {offsets = [0, 24], sizes = [16, 8], strides = [1, 1]} : vector<16x32xf32> to vector<16x8xf32>
    %59 = vector.shape_cast %58 : vector<16x8xf32> to vector<2x8x8xf32>
    %60 = tpu.concatenate %53, %55, %57, %59 in 0 : vector<2x8x8xf32>, vector<2x8x8xf32>, vector<2x8x8xf32>, vector<2x8x8xf32> -> vector<8x8x8xf32>
    %61 = arith.truncf %60 : vector<8x8x8xf32> to vector<8x8x8xbf16>
    %62 = vector.extract_strided_slice %50 {offsets = [0, 32], sizes = [16, 32], strides = [1, 1]} : vector<16x128xf32> to vector<16x32xf32>
    %63 = vector.extract_strided_slice %62 {offsets = [0, 0], sizes = [16, 8], strides = [1, 1]} : vector<16x32xf32> to vector<16x8xf32>
    %64 = vector.shape_cast %63 : vector<16x8xf32> to vector<2x8x8xf32>
    %65 = vector.extract_strided_slice %62 {offsets = [0, 8], sizes = [16, 8], strides = [1, 1]} : vector<16x32xf32> to vector<16x8xf32>
    %66 = vector.shape_cast %65 : vector<16x8xf32> to vector<2x8x8xf32>
    %67 = vector.extract_strided_slice %62 {offsets = [0, 16], sizes = [16, 8], strides = [1, 1]} : vector<16x32xf32> to vector<16x8xf32>
    %68 = vector.shape_cast %67 : vector<16x8xf32> to vector<2x8x8xf32>
    %69 = vector.extract_strided_slice %62 {offsets = [0, 24], sizes = [16, 8], strides = [1, 1]} : vector<16x32xf32> to vector<16x8xf32>
    %70 = vector.shape_cast %69 : vector<16x8xf32> to vector<2x8x8xf32>
    %71 = tpu.concatenate %64, %66, %68, %70 in 0 : vector<2x8x8xf32>, vector<2x8x8xf32>, vector<2x8x8xf32>, vector<2x8x8xf32> -> vector<8x8x8xf32>
    %72 = arith.truncf %71 : vector<8x8x8xf32> to vector<8x8x8xbf16>
    %73 = vector.extract_strided_slice %50 {offsets = [0, 64], sizes = [16, 32], strides = [1, 1]} : vector<16x128xf32> to vector<16x32xf32>
    %74 = vector.extract_strided_slice %73 {offsets = [0, 0], sizes = [16, 8], strides = [1, 1]} : vector<16x32xf32> to vector<16x8xf32>
    %75 = vector.shape_cast %74 : vector<16x8xf32> to vector<2x8x8xf32>
    %76 = vector.extract_strided_slice %73 {offsets = [0, 8], sizes = [16, 8], strides = [1, 1]} : vector<16x32xf32> to vector<16x8xf32>
    %77 = vector.shape_cast %76 : vector<16x8xf32> to vector<2x8x8xf32>
    %78 = vector.extract_strided_slice %73 {offsets = [0, 16], sizes = [16, 8], strides = [1, 1]} : vector<16x32xf32> to vector<16x8xf32>
    %79 = vector.shape_cast %78 : vector<16x8xf32> to vector<2x8x8xf32>
    %80 = vector.extract_strided_slice %73 {offsets = [0, 24], sizes = [16, 8], strides = [1, 1]} : vector<16x32xf32> to vector<16x8xf32>
    %81 = vector.shape_cast %80 : vector<16x8xf32> to vector<2x8x8xf32>
    %82 = tpu.concatenate %75, %77, %79, %81 in 0 : vector<2x8x8xf32>, vector<2x8x8xf32>, vector<2x8x8xf32>, vector<2x8x8xf32> -> vector<8x8x8xf32>
    %83 = arith.truncf %82 : vector<8x8x8xf32> to vector<8x8x8xbf16>
    "tpu.trace_start"() <{level = 10 : i32, message = "bqd,bkd->bqk"}> : () -> ()
    %cst_23 = arith.constant dense<0.000000e+00> : vector<8x8x8xf32>
    %84 = tpu.matmul %61, %72, %cst_23 {dimension_numbers = #tpu.dot_dimension_numbers<[2], [2], [1], [1], [0, 0, 0, 1, 1, 1], [0], [0]>} : vector<8x8x8xbf16>, vector<8x8x8xbf16>, vector<8x8x8xf32> -> vector<8x8x8xf32>
    "tpu.trace_stop"() : () -> ()
    %cst_24 = arith.constant 0.353553385 : f32
    %85 = vector.broadcast %cst_24 : f32 to vector<8x8x8xf32>
    %86 = arith.mulf %84, %85 : vector<8x8x8xf32>
    %87 = vector.broadcast %28 : vector<8x1x8xf32> to vector<8x8x8xf32>
    %88 = arith.addf %86, %87 : vector<8x8x8xf32>
    %cst_25 = arith.constant dense<0xFF800000> : vector<8x8xf32>
    %89 = vector.multi_reduction <maximumf>, %88, %cst_25 [2] : vector<8x8x8xf32> to vector<8x8xf32>
    %90 = vector.shape_cast %89 : vector<8x8xf32> to vector<8x8x1xf32>
    %91 = vector.broadcast %90 : vector<8x8x1xf32> to vector<8x8x8xf32>
    %92 = arith.subf %88, %91 : vector<8x8x8xf32>
    %93 = math.exp %92 : vector<8x8x8xf32>
    %cst_26 = arith.constant dense<0.000000e+00> : vector<8x8xf32>
    %94 = vector.multi_reduction <add>, %93, %cst_26 [2] : vector<8x8x8xf32> to vector<8x8xf32>
    %95 = vector.shape_cast %94 : vector<8x8xf32> to vector<8x8x1xf32>
    %96 = tpu.reciprocal %95 {approx = true} : vector<8x8x1xf32> -> vector<8x8x1xf32>
    %97 = vector.broadcast %96 : vector<8x8x1xf32> to vector<8x8x8xf32>
    %98 = arith.mulf %93, %97 : vector<8x8x8xf32>
    %99 = arith.truncf %98 : vector<8x8x8xf32> to vector<8x8x8xbf16>
    "tpu.trace_start"() <{level = 10 : i32, message = "bqk,bkd->bqd"}> : () -> ()
    %cst_27 = arith.constant dense<0.000000e+00> : vector<8x8x8xf32>
    %100 = tpu.matmul %99, %83, %cst_27 {dimension_numbers = #tpu.dot_dimension_numbers<[2], [1], [1], [2], [0, 0, 0, 1, 1, 2], [0], [0]>} : vector<8x8x8xbf16>, vector<8x8x8xbf16>, vector<8x8x8xf32> -> vector<8x8x8xf32>
    "tpu.trace_stop"() : () -> ()
    %101 = vector.shape_cast %100 : vector<8x8x8xf32> to vector<4x16x8xf32>
    %102 = vector.extract_strided_slice %101 {offsets = [0, 0, 0], sizes = [1, 16, 8], strides = [1, 1, 1]} : vector<4x16x8xf32> to vector<1x16x8xf32>
    %103 = vector.shape_cast %102 : vector<1x16x8xf32> to vector<16x8xf32>
    %104 = vector.extract_strided_slice %101 {offsets = [1, 0, 0], sizes = [1, 16, 8], strides = [1, 1, 1]} : vector<4x16x8xf32> to vector<1x16x8xf32>
    %105 = vector.shape_cast %104 : vector<1x16x8xf32> to vector<16x8xf32>
    %106 = vector.extract_strided_slice %101 {offsets = [2, 0, 0], sizes = [1, 16, 8], strides = [1, 1, 1]} : vector<4x16x8xf32> to vector<1x16x8xf32>
    %107 = vector.shape_cast %106 : vector<1x16x8xf32> to vector<16x8xf32>
    %108 = vector.extract_strided_slice %101 {offsets = [3, 0, 0], sizes = [1, 16, 8], strides = [1, 1, 1]} : vector<4x16x8xf32> to vector<1x16x8xf32>
    %109 = vector.shape_cast %108 : vector<1x16x8xf32> to vector<16x8xf32>
    %110 = tpu.concatenate %103, %105, %107, %109 in 1 : vector<16x8xf32>, vector<16x8xf32>, vector<16x8xf32>, vector<16x8xf32> -> vector<16x32xf32>
    %111 = arith.truncf %110 : vector<16x32xf32> to vector<16x32xbf16>
    %cst_28 = arith.constant dense<0.000000e+00> : vector<16x32xf32>
    %112 = tpu.matmul %111, %32, %cst_28 {dimension_numbers = #tpu.dot_dimension_numbers<[1], [0], [0], [1], [0, 0, 1, 1], [], []>} : vector<16x32xbf16>, vector<32x32xbf16>, vector<16x32xf32> -> vector<16x32xf32>
    %113 = vector.broadcast %40 : vector<1x32xf32> to vector<16x32xf32>
    %114 = arith.addf %112, %113 : vector<16x32xf32>
    %115 = arith.addf %20, %114 : vector<16x32xf32>
    %cst_29 = arith.constant dense<0.000000e+00> : vector<16xf32>
    %116 = vector.multi_reduction <add>, %115, %cst_29 [1] : vector<16x32xf32> to vector<16xf32>
    %117 = vector.shape_cast %116 : vector<16xf32> to vector<16x1xf32>
    %cst_30 = arith.constant 3.200000e+01 : f32
    %118 = vector.broadcast %cst_30 : f32 to vector<16x1xf32>
    %119 = arith.divf %117, %118 : vector<16x1xf32>
    %120 = vector.broadcast %119 : vector<16x1xf32> to vector<16x32xf32>
    %121 = arith.subf %115, %120 : vector<16x32xf32>
    %122 = arith.mulf %121, %121 : vector<16x32xf32>
    %cst_31 = arith.constant dense<0.000000e+00> : vector<16xf32>
    %123 = vector.multi_reduction <add>, %122, %cst_31 [1] : vector<16x32xf32> to vector<16xf32>
    %124 = vector.shape_cast %123 : vector<16xf32> to vector<16x1xf32>
    %cst_32 = arith.constant 3.200000e+01 : f32
    %125 = vector.broadcast %cst_32 : f32 to vector<16x1xf32>
    %126 = arith.divf %124, %125 : vector<16x1xf32>
    %127 = vector.broadcast %119 : vector<16x1xf32> to vector<16x32xf32>
    %128 = arith.subf %115, %127 : vector<16x32xf32>
    %cst_33 = arith.constant 9.99999974E-6 : f32
    %129 = vector.broadcast %cst_33 : f32 to vector<16x1xf32>
    %130 = arith.addf %126, %129 : vector<16x1xf32>
    %131 = math.rsqrt %130 : vector<16x1xf32>
    %132 = vector.broadcast %131 : vector<16x1xf32> to vector<16x32xf32>
    %133 = arith.mulf %128, %132 : vector<16x32xf32>
    %134 = vector.broadcast %41 : vector<1x32xf32> to vector<16x32xf32>
    %135 = arith.mulf %133, %134 : vector<16x32xf32>
    %136 = vector.broadcast %42 : vector<1x32xf32> to vector<16x32xf32>
    %137 = arith.addf %135, %136 : vector<16x32xf32>
    %138 = arith.truncf %137 : vector<16x32xf32> to vector<16x32xbf16>
    %cst_34 = arith.constant dense<0.000000e+00> : vector<16x64xf32>
    %139 = tpu.matmul %138, %34, %cst_34 {dimension_numbers = #tpu.dot_dimension_numbers<[1], [0], [0], [1], [0, 0, 1, 1], [], []>} : vector<16x32xbf16>, vector<32x64xbf16>, vector<16x64xf32> -> vector<16x64xf32>
    %140 = vector.broadcast %43 : vector<1x64xf32> to vector<16x64xf32>
    %141 = arith.addf %139, %140 : vector<16x64xf32>
    %cst_35 = arith.constant 5.000000e-01 : f32
    %142 = vector.broadcast %cst_35 : f32 to vector<16x64xf32>
    %143 = arith.mulf %142, %141 : vector<16x64xf32>
    %cst_36 = arith.constant 4.471500e-02 : f32
    %144 = vector.broadcast %cst_36 : f32 to vector<16x64xf32>
    %145 = arith.mulf %144, %141 : vector<16x64xf32>
    %146 = arith.mulf %145, %141 : vector<16x64xf32>
    %147 = arith.mulf %146, %141 : vector<16x64xf32>
    %148 = arith.addf %141, %147 : vector<16x64xf32>
    %cst_37 = arith.constant 0.797884583 : f32
    %149 = vector.broadcast %cst_37 : f32 to vector<16x64xf32>
    %150 = arith.mulf %149, %148 : vector<16x64xf32>
    %151 = math.tanh %150 : vector<16x64xf32>
    %cst_38 = arith.constant 1.000000e+00 : f32
    %152 = vector.broadcast %cst_38 : f32 to vector<16x64xf32>
    %153 = arith.addf %152, %151 : vector<16x64xf32>
    %154 = arith.mulf %143, %153 : vector<16x64xf32>
    %155 = arith.truncf %154 : vector<16x64xf32> to vector<16x64xbf16>
    %cst_39 = arith.constant dense<0.000000e+00> : vector<16x32xf32>
    %156 = tpu.matmul %155, %36, %cst_39 {dimension_numbers = #tpu.dot_dimension_numbers<[1], [0], [0], [1], [0, 0, 1, 1], [], []>} : vector<16x64xbf16>, vector<64x32xbf16>, vector<16x32xf32> -> vector<16x32xf32>
    %157 = vector.broadcast %44 : vector<1x32xf32> to vector<16x32xf32>
    %158 = arith.addf %156, %157 : vector<16x32xf32>
    %159 = arith.addf %137, %158 : vector<16x32xf32>
    %cst_40 = arith.constant dense<0.000000e+00> : vector<16xf32>
    %160 = vector.multi_reduction <add>, %159, %cst_40 [1] : vector<16x32xf32> to vector<16xf32>
    %161 = vector.shape_cast %160 : vector<16xf32> to vector<16x1xf32>
    %cst_41 = arith.constant 3.200000e+01 : f32
    %162 = vector.broadcast %cst_41 : f32 to vector<16x1xf32>
    %163 = arith.divf %161, %162 : vector<16x1xf32>
    %164 = vector.broadcast %163 : vector<16x1xf32> to vector<16x32xf32>
    %165 = arith.subf %159, %164 : vector<16x32xf32>
    %166 = arith.mulf %165, %165 : vector<16x32xf32>
    %cst_42 = arith.constant dense<0.000000e+00> : vector<16xf32>
    %167 = vector.multi_reduction <add>, %166, %cst_42 [1] : vector<16x32xf32> to vector<16xf32>
    %168 = vector.shape_cast %167 : vector<16xf32> to vector<16x1xf32>
    %cst_43 = arith.constant 3.200000e+01 : f32
    %169 = vector.broadcast %cst_43 : f32 to vector<16x1xf32>
    %170 = arith.divf %168, %169 : vector<16x1xf32>
    %171 = vector.broadcast %163 : vector<16x1xf32> to vector<16x32xf32>
    %172 = arith.subf %159, %171 : vector<16x32xf32>
    %cst_44 = arith.constant 9.99999974E-6 : f32
    %173 = vector.broadcast %cst_44 : f32 to vector<16x1xf32>
    %174 = arith.addf %170, %173 : vector<16x1xf32>
    %175 = math.rsqrt %174 : vector<16x1xf32>
    %176 = vector.broadcast %175 : vector<16x1xf32> to vector<16x32xf32>
    %177 = arith.mulf %172, %176 : vector<16x32xf32>
    %178 = vector.broadcast %45 : vector<1x32xf32> to vector<16x32xf32>
    %179 = arith.mulf %177, %178 : vector<16x32xf32>
    %180 = vector.broadcast %46 : vector<1x32xf32> to vector<16x32xf32>
    %181 = arith.addf %179, %180 : vector<16x32xf32>
    %c1 = arith.constant 1 : index
    %c0_45 = arith.constant 0 : index
    %c0_46 = arith.constant 0 : index
    %182 = vector.load %arg4[%c1, %c0_45, %c0_46] : memref<2x32x128xbf16, #tpu.memory_space<vmem>>, vector<1x32x128xbf16>
    %183 = vector.shape_cast %182 : vector<1x32x128xbf16> to vector<32x128xbf16>
    %c1_47 = arith.constant 1 : index
    %c0_48 = arith.constant 0 : index
    %c0_49 = arith.constant 0 : index
    %184 = vector.load %arg5[%c1_47, %c0_48, %c0_49] : memref<2x32x32xbf16, #tpu.memory_space<vmem>>, vector<1x32x32xbf16>
    %185 = vector.shape_cast %184 : vector<1x32x32xbf16> to vector<32x32xbf16>
    %c1_50 = arith.constant 1 : index
    %c0_51 = arith.constant 0 : index
    %c0_52 = arith.constant 0 : index
    %186 = vector.load %arg6[%c1_50, %c0_51, %c0_52] : memref<2x32x64xbf16, #tpu.memory_space<vmem>>, vector<1x32x64xbf16>
    %187 = vector.shape_cast %186 : vector<1x32x64xbf16> to vector<32x64xbf16>
    %c1_53 = arith.constant 1 : index
    %c0_54 = arith.constant 0 : index
    %c0_55 = arith.constant 0 : index
    %188 = vector.load %arg7[%c1_53, %c0_54, %c0_55] : memref<2x64x32xbf16, #tpu.memory_space<vmem>>, vector<1x64x32xbf16>
    %189 = vector.shape_cast %188 : vector<1x64x32xbf16> to vector<64x32xbf16>
    %c1_56 = arith.constant 1 : index
    %c0_57 = arith.constant 0 : index
    %c0_58 = arith.constant 0 : index
    %190 = vector.load %arg8[%c1_56, %c0_57, %c0_58] : memref<2x8x128xf32, #tpu.memory_space<vmem>>, vector<1x8x128xf32>
    %191 = vector.shape_cast %190 : vector<1x8x128xf32> to vector<8x128xf32>
    %192 = vector.extract_strided_slice %191 {offsets = [0, 0], sizes = [1, 128], strides = [1, 1]} : vector<8x128xf32> to vector<1x128xf32>
    %193 = vector.extract_strided_slice %191 {offsets = [1, 0], sizes = [1, 32], strides = [1, 1]} : vector<8x128xf32> to vector<1x32xf32>
    %194 = vector.extract_strided_slice %191 {offsets = [2, 0], sizes = [1, 32], strides = [1, 1]} : vector<8x128xf32> to vector<1x32xf32>
    %195 = vector.extract_strided_slice %191 {offsets = [3, 0], sizes = [1, 32], strides = [1, 1]} : vector<8x128xf32> to vector<1x32xf32>
    %196 = vector.extract_strided_slice %191 {offsets = [4, 0], sizes = [1, 64], strides = [1, 1]} : vector<8x128xf32> to vector<1x64xf32>
    %197 = vector.extract_strided_slice %191 {offsets = [5, 0], sizes = [1, 32], strides = [1, 1]} : vector<8x128xf32> to vector<1x32xf32>
    %198 = vector.extract_strided_slice %191 {offsets = [6, 0], sizes = [1, 32], strides = [1, 1]} : vector<8x128xf32> to vector<1x32xf32>
    %199 = vector.extract_strided_slice %191 {offsets = [7, 0], sizes = [1, 32], strides = [1, 1]} : vector<8x128xf32> to vector<1x32xf32>
    %200 = arith.truncf %181 : vector<16x32xf32> to vector<16x32xbf16>
    %cst_59 = arith.constant dense<0.000000e+00> : vector<16x128xf32>
    %201 = tpu.matmul %200, %183, %cst_59 {dimension_numbers = #tpu.dot_dimension_numbers<[1], [0], [0], [1], [0, 0, 1, 1], [], []>} : vector<16x32xbf16>, vector<32x128xbf16>, vector<16x128xf32> -> vector<16x128xf32>
    %202 = vector.broadcast %192 : vector<1x128xf32> to vector<16x128xf32>
    %203 = arith.addf %201, %202 : vector<16x128xf32>
    %204 = vector.extract_strided_slice %203 {offsets = [0, 0], sizes = [16, 32], strides = [1, 1]} : vector<16x128xf32> to vector<16x32xf32>
    %205 = vector.extract_strided_slice %204 {offsets = [0, 0], sizes = [16, 8], strides = [1, 1]} : vector<16x32xf32> to vector<16x8xf32>
    %206 = vector.shape_cast %205 : vector<16x8xf32> to vector<2x8x8xf32>
    %207 = vector.extract_strided_slice %204 {offsets = [0, 8], sizes = [16, 8], strides = [1, 1]} : vector<16x32xf32> to vector<16x8xf32>
    %208 = vector.shape_cast %207 : vector<16x8xf32> to vector<2x8x8xf32>
    %209 = vector.extract_strided_slice %204 {offsets = [0, 16], sizes = [16, 8], strides = [1, 1]} : vector<16x32xf32> to vector<16x8xf32>
    %210 = vector.shape_cast %209 : vector<16x8xf32> to vector<2x8x8xf32>
    %211 = vector.extract_strided_slice %204 {offsets = [0, 24], sizes = [16, 8], strides = [1, 1]} : vector<16x32xf32> to vector<16x8xf32>
    %212 = vector.shape_cast %211 : vector<16x8xf32> to vector<2x8x8xf32>
    %213 = tpu.concatenate %206, %208, %210, %212 in 0 : vector<2x8x8xf32>, vector<2x8x8xf32>, vector<2x8x8xf32>, vector<2x8x8xf32> -> vector<8x8x8xf32>
    %214 = arith.truncf %213 : vector<8x8x8xf32> to vector<8x8x8xbf16>
    %215 = vector.extract_strided_slice %203 {offsets = [0, 32], sizes = [16, 32], strides = [1, 1]} : vector<16x128xf32> to vector<16x32xf32>
    %216 = vector.extract_strided_slice %215 {offsets = [0, 0], sizes = [16, 8], strides = [1, 1]} : vector<16x32xf32> to vector<16x8xf32>
    %217 = vector.shape_cast %216 : vector<16x8xf32> to vector<2x8x8xf32>
    %218 = vector.extract_strided_slice %215 {offsets = [0, 8], sizes = [16, 8], strides = [1, 1]} : vector<16x32xf32> to vector<16x8xf32>
    %219 = vector.shape_cast %218 : vector<16x8xf32> to vector<2x8x8xf32>
    %220 = vector.extract_strided_slice %215 {offsets = [0, 16], sizes = [16, 8], strides = [1, 1]} : vector<16x32xf32> to vector<16x8xf32>
    %221 = vector.shape_cast %220 : vector<16x8xf32> to vector<2x8x8xf32>
    %222 = vector.extract_strided_slice %215 {offsets = [0, 24], sizes = [16, 8], strides = [1, 1]} : vector<16x32xf32> to vector<16x8xf32>
    %223 = vector.shape_cast %222 : vector<16x8xf32> to vector<2x8x8xf32>
    %224 = tpu.concatenate %217, %219, %221, %223 in 0 : vector<2x8x8xf32>, vector<2x8x8xf32>, vector<2x8x8xf32>, vector<2x8x8xf32> -> vector<8x8x8xf32>
    %225 = arith.truncf %224 : vector<8x8x8xf32> to vector<8x8x8xbf16>
    %226 = vector.extract_strided_slice %203 {offsets = [0, 64], sizes = [16, 32], strides = [1, 1]} : vector<16x128xf32> to vector<16x32xf32>
    %227 = vector.extract_strided_slice %226 {offsets = [0, 0], sizes = [16, 8], strides = [1, 1]} : vector<16x32xf32> to vector<16x8xf32>
    %228 = vector.shape_cast %227 : vector<16x8xf32> to vector<2x8x8xf32>
    %229 = vector.extract_strided_slice %226 {offsets = [0, 8], sizes = [16, 8], strides = [1, 1]} : vector<16x32xf32> to vector<16x8xf32>
    %230 = vector.shape_cast %229 : vector<16x8xf32> to vector<2x8x8xf32>
    %231 = vector.extract_strided_slice %226 {offsets = [0, 16], sizes = [16, 8], strides = [1, 1]} : vector<16x32xf32> to vector<16x8xf32>
    %232 = vector.shape_cast %231 : vector<16x8xf32> to vector<2x8x8xf32>
    %233 = vector.extract_strided_slice %226 {offsets = [0, 24], sizes = [16, 8], strides = [1, 1]} : vector<16x32xf32> to vector<16x8xf32>
    %234 = vector.shape_cast %233 : vector<16x8xf32> to vector<2x8x8xf32>
    %235 = tpu.concatenate %228, %230, %232, %234 in 0 : vector<2x8x8xf32>, vector<2x8x8xf32>, vector<2x8x8xf32>, vector<2x8x8xf32> -> vector<8x8x8xf32>
    %236 = arith.truncf %235 : vector<8x8x8xf32> to vector<8x8x8xbf16>
    "tpu.trace_start"() <{level = 10 : i32, message = "bqd,bkd->bqk"}> : () -> ()
    %cst_60 = arith.constant dense<0.000000e+00> : vector<8x8x8xf32>
    %237 = tpu.matmul %214, %225, %cst_60 {dimension_numbers = #tpu.dot_dimension_numbers<[2], [2], [1], [1], [0, 0, 0, 1, 1, 1], [0], [0]>} : vector<8x8x8xbf16>, vector<8x8x8xbf16>, vector<8x8x8xf32> -> vector<8x8x8xf32>
    "tpu.trace_stop"() : () -> ()
    %cst_61 = arith.constant 0.353553385 : f32
    %238 = vector.broadcast %cst_61 : f32 to vector<8x8x8xf32>
    %239 = arith.mulf %237, %238 : vector<8x8x8xf32>
    %240 = vector.broadcast %28 : vector<8x1x8xf32> to vector<8x8x8xf32>
    %241 = arith.addf %239, %240 : vector<8x8x8xf32>
    %cst_62 = arith.constant dense<0xFF800000> : vector<8x8xf32>
    %242 = vector.multi_reduction <maximumf>, %241, %cst_62 [2] : vector<8x8x8xf32> to vector<8x8xf32>
    %243 = vector.shape_cast %242 : vector<8x8xf32> to vector<8x8x1xf32>
    %244 = vector.broadcast %243 : vector<8x8x1xf32> to vector<8x8x8xf32>
    %245 = arith.subf %241, %244 : vector<8x8x8xf32>
    %246 = math.exp %245 : vector<8x8x8xf32>
    %cst_63 = arith.constant dense<0.000000e+00> : vector<8x8xf32>
    %247 = vector.multi_reduction <add>, %246, %cst_63 [2] : vector<8x8x8xf32> to vector<8x8xf32>
    %248 = vector.shape_cast %247 : vector<8x8xf32> to vector<8x8x1xf32>
    %249 = tpu.reciprocal %248 {approx = true} : vector<8x8x1xf32> -> vector<8x8x1xf32>
    %250 = vector.broadcast %249 : vector<8x8x1xf32> to vector<8x8x8xf32>
    %251 = arith.mulf %246, %250 : vector<8x8x8xf32>
    %252 = arith.truncf %251 : vector<8x8x8xf32> to vector<8x8x8xbf16>
    "tpu.trace_start"() <{level = 10 : i32, message = "bqk,bkd->bqd"}> : () -> ()
    %cst_64 = arith.constant dense<0.000000e+00> : vector<8x8x8xf32>
    %253 = tpu.matmul %252, %236, %cst_64 {dimension_numbers = #tpu.dot_dimension_numbers<[2], [1], [1], [2], [0, 0, 0, 1, 1, 2], [0], [0]>} : vector<8x8x8xbf16>, vector<8x8x8xbf16>, vector<8x8x8xf32> -> vector<8x8x8xf32>
    "tpu.trace_stop"() : () -> ()
    %254 = vector.shape_cast %253 : vector<8x8x8xf32> to vector<4x16x8xf32>
    %255 = vector.extract_strided_slice %254 {offsets = [0, 0, 0], sizes = [1, 16, 8], strides = [1, 1, 1]} : vector<4x16x8xf32> to vector<1x16x8xf32>
    %256 = vector.shape_cast %255 : vector<1x16x8xf32> to vector<16x8xf32>
    %257 = vector.extract_strided_slice %254 {offsets = [1, 0, 0], sizes = [1, 16, 8], strides = [1, 1, 1]} : vector<4x16x8xf32> to vector<1x16x8xf32>
    %258 = vector.shape_cast %257 : vector<1x16x8xf32> to vector<16x8xf32>
    %259 = vector.extract_strided_slice %254 {offsets = [2, 0, 0], sizes = [1, 16, 8], strides = [1, 1, 1]} : vector<4x16x8xf32> to vector<1x16x8xf32>
    %260 = vector.shape_cast %259 : vector<1x16x8xf32> to vector<16x8xf32>
    %261 = vector.extract_strided_slice %254 {offsets = [3, 0, 0], sizes = [1, 16, 8], strides = [1, 1, 1]} : vector<4x16x8xf32> to vector<1x16x8xf32>
    %262 = vector.shape_cast %261 : vector<1x16x8xf32> to vector<16x8xf32>
    %263 = tpu.concatenate %256, %258, %260, %262 in 1 : vector<16x8xf32>, vector<16x8xf32>, vector<16x8xf32>, vector<16x8xf32> -> vector<16x32xf32>
    %264 = arith.truncf %263 : vector<16x32xf32> to vector<16x32xbf16>
    %cst_65 = arith.constant dense<0.000000e+00> : vector<16x32xf32>
    %265 = tpu.matmul %264, %185, %cst_65 {dimension_numbers = #tpu.dot_dimension_numbers<[1], [0], [0], [1], [0, 0, 1, 1], [], []>} : vector<16x32xbf16>, vector<32x32xbf16>, vector<16x32xf32> -> vector<16x32xf32>
    %266 = vector.broadcast %193 : vector<1x32xf32> to vector<16x32xf32>
    %267 = arith.addf %265, %266 : vector<16x32xf32>
    %268 = arith.addf %181, %267 : vector<16x32xf32>
    %cst_66 = arith.constant dense<0.000000e+00> : vector<16xf32>
    %269 = vector.multi_reduction <add>, %268, %cst_66 [1] : vector<16x32xf32> to vector<16xf32>
    %270 = vector.shape_cast %269 : vector<16xf32> to vector<16x1xf32>
    %cst_67 = arith.constant 3.200000e+01 : f32
    %271 = vector.broadcast %cst_67 : f32 to vector<16x1xf32>
    %272 = arith.divf %270, %271 : vector<16x1xf32>
    %273 = vector.broadcast %272 : vector<16x1xf32> to vector<16x32xf32>
    %274 = arith.subf %268, %273 : vector<16x32xf32>
    %275 = arith.mulf %274, %274 : vector<16x32xf32>
    %cst_68 = arith.constant dense<0.000000e+00> : vector<16xf32>
    %276 = vector.multi_reduction <add>, %275, %cst_68 [1] : vector<16x32xf32> to vector<16xf32>
    %277 = vector.shape_cast %276 : vector<16xf32> to vector<16x1xf32>
    %cst_69 = arith.constant 3.200000e+01 : f32
    %278 = vector.broadcast %cst_69 : f32 to vector<16x1xf32>
    %279 = arith.divf %277, %278 : vector<16x1xf32>
    %280 = vector.broadcast %272 : vector<16x1xf32> to vector<16x32xf32>
    %281 = arith.subf %268, %280 : vector<16x32xf32>
    %cst_70 = arith.constant 9.99999974E-6 : f32
    %282 = vector.broadcast %cst_70 : f32 to vector<16x1xf32>
    %283 = arith.addf %279, %282 : vector<16x1xf32>
    %284 = math.rsqrt %283 : vector<16x1xf32>
    %285 = vector.broadcast %284 : vector<16x1xf32> to vector<16x32xf32>
    %286 = arith.mulf %281, %285 : vector<16x32xf32>
    %287 = vector.broadcast %194 : vector<1x32xf32> to vector<16x32xf32>
    %288 = arith.mulf %286, %287 : vector<16x32xf32>
    %289 = vector.broadcast %195 : vector<1x32xf32> to vector<16x32xf32>
    %290 = arith.addf %288, %289 : vector<16x32xf32>
    %291 = arith.truncf %290 : vector<16x32xf32> to vector<16x32xbf16>
    %cst_71 = arith.constant dense<0.000000e+00> : vector<16x64xf32>
    %292 = tpu.matmul %291, %187, %cst_71 {dimension_numbers = #tpu.dot_dimension_numbers<[1], [0], [0], [1], [0, 0, 1, 1], [], []>} : vector<16x32xbf16>, vector<32x64xbf16>, vector<16x64xf32> -> vector<16x64xf32>
    %293 = vector.broadcast %196 : vector<1x64xf32> to vector<16x64xf32>
    %294 = arith.addf %292, %293 : vector<16x64xf32>
    %cst_72 = arith.constant 5.000000e-01 : f32
    %295 = vector.broadcast %cst_72 : f32 to vector<16x64xf32>
    %296 = arith.mulf %295, %294 : vector<16x64xf32>
    %cst_73 = arith.constant 4.471500e-02 : f32
    %297 = vector.broadcast %cst_73 : f32 to vector<16x64xf32>
    %298 = arith.mulf %297, %294 : vector<16x64xf32>
    %299 = arith.mulf %298, %294 : vector<16x64xf32>
    %300 = arith.mulf %299, %294 : vector<16x64xf32>
    %301 = arith.addf %294, %300 : vector<16x64xf32>
    %cst_74 = arith.constant 0.797884583 : f32
    %302 = vector.broadcast %cst_74 : f32 to vector<16x64xf32>
    %303 = arith.mulf %302, %301 : vector<16x64xf32>
    %304 = math.tanh %303 : vector<16x64xf32>
    %cst_75 = arith.constant 1.000000e+00 : f32
    %305 = vector.broadcast %cst_75 : f32 to vector<16x64xf32>
    %306 = arith.addf %305, %304 : vector<16x64xf32>
    %307 = arith.mulf %296, %306 : vector<16x64xf32>
    %308 = arith.truncf %307 : vector<16x64xf32> to vector<16x64xbf16>
    %cst_76 = arith.constant dense<0.000000e+00> : vector<16x32xf32>
    %309 = tpu.matmul %308, %189, %cst_76 {dimension_numbers = #tpu.dot_dimension_numbers<[1], [0], [0], [1], [0, 0, 1, 1], [], []>} : vector<16x64xbf16>, vector<64x32xbf16>, vector<16x32xf32> -> vector<16x32xf32>
    %310 = vector.broadcast %197 : vector<1x32xf32> to vector<16x32xf32>
    %311 = arith.addf %309, %310 : vector<16x32xf32>
    %312 = arith.addf %290, %311 : vector<16x32xf32>
    %cst_77 = arith.constant dense<0.000000e+00> : vector<16xf32>
    %313 = vector.multi_reduction <add>, %312, %cst_77 [1] : vector<16x32xf32> to vector<16xf32>
    %314 = vector.shape_cast %313 : vector<16xf32> to vector<16x1xf32>
    %cst_78 = arith.constant 3.200000e+01 : f32
    %315 = vector.broadcast %cst_78 : f32 to vector<16x1xf32>
    %316 = arith.divf %314, %315 : vector<16x1xf32>
    %317 = vector.broadcast %316 : vector<16x1xf32> to vector<16x32xf32>
    %318 = arith.subf %312, %317 : vector<16x32xf32>
    %319 = arith.mulf %318, %318 : vector<16x32xf32>
    %cst_79 = arith.constant dense<0.000000e+00> : vector<16xf32>
    %320 = vector.multi_reduction <add>, %319, %cst_79 [1] : vector<16x32xf32> to vector<16xf32>
    %321 = vector.shape_cast %320 : vector<16xf32> to vector<16x1xf32>
    %cst_80 = arith.constant 3.200000e+01 : f32
    %322 = vector.broadcast %cst_80 : f32 to vector<16x1xf32>
    %323 = arith.divf %321, %322 : vector<16x1xf32>
    %324 = vector.broadcast %316 : vector<16x1xf32> to vector<16x32xf32>
    %325 = arith.subf %312, %324 : vector<16x32xf32>
    %cst_81 = arith.constant 9.99999974E-6 : f32
    %326 = vector.broadcast %cst_81 : f32 to vector<16x1xf32>
    %327 = arith.addf %323, %326 : vector<16x1xf32>
    %328 = math.rsqrt %327 : vector<16x1xf32>
    %329 = vector.broadcast %328 : vector<16x1xf32> to vector<16x32xf32>
    %330 = arith.mulf %325, %329 : vector<16x32xf32>
    %331 = vector.broadcast %198 : vector<1x32xf32> to vector<16x32xf32>
    %332 = arith.mulf %330, %331 : vector<16x32xf32>
    %333 = vector.broadcast %199 : vector<1x32xf32> to vector<16x32xf32>
    %334 = arith.addf %332, %333 : vector<16x32xf32>
    %cst_82 = arith.constant dense<0.000000e+00> : vector<2xf32>
    %335 = vector.multi_reduction <add>, %4, %cst_82 [1] : vector<2x8xf32> to vector<2xf32>
    %336 = vector.shape_cast %335 : vector<2xf32> to vector<2x1xf32>
    %cst_83 = arith.constant 0.000000e+00 : f32
    %337 = vector.broadcast %cst_83 : f32 to vector<2x1xf32>
    %338 = arith.cmpf ogt, %336, %337 : vector<2x1xf32>
    %cst_84 = arith.constant 1.000000e+00 : f32
    %339 = vector.broadcast %cst_84 : f32 to vector<2x1xf32>
    %340 = arith.subf %336, %339 : vector<2x1xf32>
    %cst_85 = arith.constant 7.000000e+00 : f32
    %341 = vector.broadcast %cst_85 : f32 to vector<2x1xf32>
    %342 = arith.select %338, %340, %341 : vector<2x1xi1>, vector<2x1xf32>
    %343 = arith.fptosi %342 : vector<2x1xf32> to vector<2x1xi32>
    %344 = tpu.iota {dimensions = array<i32: 0>} : vector<2x1xi32>
    %c8_i32 = arith.constant 8 : i32
    %345 = vector.broadcast %c8_i32 : i32 to vector<2x1xi32>
    %346 = arith.muli %344, %345 : vector<2x1xi32>
    %347 = arith.addi %346, %343 : vector<2x1xi32>
    %348 = tpu.iota {dimensions = array<i32: 1>} : vector<2x16xi32>
    %349 = vector.broadcast %347 : vector<2x1xi32> to vector<2x16xi32>
    %350 = arith.cmpi eq, %348, %349 : vector<2x16xi32>
    %351 = arith.extui %350 : vector<2x16xi1> to vector<2x16xi32>
    %352 = arith.sitofp %351 : vector<2x16xi32> to vector<2x16xf32>
    %353 = arith.truncf %352 : vector<2x16xf32> to vector<2x16xbf16>
    %354 = arith.truncf %334 : vector<16x32xf32> to vector<16x32xbf16>
    %cst_86 = arith.constant dense<0.000000e+00> : vector<2x32xf32>
    %355 = tpu.matmul %353, %354, %cst_86 {dimension_numbers = #tpu.dot_dimension_numbers<[1], [0], [0], [1], [0, 0, 1, 1], [], []>} : vector<2x16xbf16>, vector<16x32xbf16>, vector<2x32xf32> -> vector<2x32xf32>
    %356 = arith.truncf %355 : vector<2x32xf32> to vector<2x32xbf16>
    %c0_87 = arith.constant 0 : index
    %c0_88 = arith.constant 0 : index
    %357 = vector.load %arg9[%c0_87, %c0_88] : memref<32x32xbf16, #tpu.memory_space<vmem>>, vector<32x32xbf16>
    %cst_89 = arith.constant dense<0.000000e+00> : vector<2x32xf32>
    %358 = tpu.matmul %356, %357, %cst_89 {dimension_numbers = #tpu.dot_dimension_numbers<[1], [0], [0], [1], [0, 0, 1, 1], [], []>} : vector<2x32xbf16>, vector<32x32xbf16>, vector<2x32xf32> -> vector<2x32xf32>
    %c0_90 = arith.constant 0 : index
    %c0_91 = arith.constant 0 : index
    %359 = vector.load %arg10[%c0_90, %c0_91] : memref<1x32xf32, #tpu.memory_space<vmem>>, vector<1x32xf32>
    %360 = vector.broadcast %359 : vector<1x32xf32> to vector<2x32xf32>
    %361 = arith.addf %358, %360 : vector<2x32xf32>
    %362 = math.tanh %361 : vector<2x32xf32>
    %363 = arith.truncf %362 : vector<2x32xf32> to vector<2x32xbf16>
    %c0_92 = arith.constant 0 : index
    %c0_93 = arith.constant 0 : index
    %364 = vector.load %arg11[%c0_92, %c0_93] : memref<32x2xbf16, #tpu.memory_space<vmem>>, vector<32x2xbf16>
    %cst_94 = arith.constant dense<0.000000e+00> : vector<2x2xf32>
    %365 = tpu.matmul %363, %364, %cst_94 {dimension_numbers = #tpu.dot_dimension_numbers<[1], [0], [0], [1], [0, 0, 1, 1], [], []>} : vector<2x32xbf16>, vector<32x2xbf16>, vector<2x2xf32> -> vector<2x2xf32>
    %c0_95 = arith.constant 0 : index
    %c0_96 = arith.constant 0 : index
    %366 = vector.load %arg12[%c0_95, %c0_96] : memref<1x2xf32, #tpu.memory_space<vmem>>, vector<1x2xf32>
    %367 = vector.broadcast %366 : vector<1x2xf32> to vector<2x2xf32>
    %368 = arith.addf %365, %367 : vector<2x2xf32>
    %cst_97 = arith.constant dense<0xFF800000> : vector<2xf32>
    %369 = vector.multi_reduction <maximumf>, %368, %cst_97 [1] : vector<2x2xf32> to vector<2xf32>
    %370 = vector.shape_cast %369 : vector<2xf32> to vector<2x1xf32>
    %371 = vector.broadcast %370 : vector<2x1xf32> to vector<2x2xf32>
    %372 = arith.subf %368, %371 : vector<2x2xf32>
    %373 = math.exp %372 : vector<2x2xf32>
    %cst_98 = arith.constant dense<0.000000e+00> : vector<2xf32>
    %374 = vector.multi_reduction <add>, %373, %cst_98 [1] : vector<2x2xf32> to vector<2xf32>
    %375 = vector.shape_cast %374 : vector<2xf32> to vector<2x1xf32>
    %376 = vector.broadcast %375 : vector<2x1xf32> to vector<2x2xf32>
    %377 = arith.divf %373, %376 : vector<2x2xf32>
    %c0_99 = arith.constant 0 : index
    %c0_100 = arith.constant 0 : index
    %378 = vector.load %arg13[%c0_99, %c0_100] : memref<2x2xf32, #tpu.memory_space<vmem>>, vector<2x2xf32>
    tpu.vector_store %arg13[%c0_99, %c0_100], %377 {strides = array<i32>} : memref<2x2xf32, #tpu.memory_space<vmem>>, vector<2x2xf32>,
    %379 = math.log %375 : vector<2x1xf32>
    %380 = vector.broadcast %379 : vector<2x1xf32> to vector<2x2xf32>
    %381 = arith.subf %372, %380 : vector<2x2xf32>
    %382 = tpu.iota {dimensions = array<i32: 1>} : vector<2x2xi32>
    %c0_101 = arith.constant 0 : index
    %c0_102 = arith.constant 0 : index
    %383 = vector.load %arg1[%c0_101, %c0_102] : memref<2x1xi32, #tpu.memory_space<vmem>>, vector<2x1xi32>
    %384 = vector.broadcast %383 : vector<2x1xi32> to vector<2x2xi32>
    %385 = arith.cmpi eq, %382, %384 : vector<2x2xi32>
    %386 = arith.extui %385 : vector<2x2xi1> to vector<2x2xi32>
    %387 = arith.sitofp %386 : vector<2x2xi32> to vector<2x2xf32>
    %388 = arith.mulf %387, %381 : vector<2x2xf32>
    %389 = vector.shape_cast %388 : vector<2x2xf32> to vector<1x2x2xf32>
    %cst_103 = arith.constant dense<0.000000e+00> : vector<1xf32>
    %390 = vector.multi_reduction <add>, %389, %cst_103 [1, 2] : vector<1x2x2xf32> to vector<1xf32>
    %391 = vector.shape_cast %390 : vector<1xf32> to vector<1x1x1xf32>
    %392 = vector.extract %391[0, 0, 0] : f32 from vector<1x1x1xf32>
    %393 = vector.broadcast %392 : f32 to vector<1x1xf32>
    %cst_104 = arith.constant 0.000000e+00 : f32
    %394 = vector.broadcast %cst_104 : f32 to vector<1x1xf32>
    %395 = arith.subf %394, %393 : vector<1x1xf32>
    %cst_105 = arith.constant 5.000000e-01 : f32
    %396 = vector.broadcast %cst_105 : f32 to vector<1x1xf32>
    %397 = arith.mulf %395, %396 : vector<1x1xf32>
    %c0_106 = arith.constant 0 : index
    %c0_107 = arith.constant 0 : index
    %398 = vector.load %arg14[%c0_106, %c0_107] : memref<1x1xf32, #tpu.memory_space<vmem>>, vector<1x1xf32>
    tpu.vector_store %arg14[%c0_106, %c0_107], %397 {strides = array<i32>} : memref<1x1xf32, #tpu.memory_space<vmem>>, vector<1x1xf32>,
    return
  }
}

</mosaic_0001>

<bundles_post_ra>
// kernel: tpu_custom_call.1
= control target key start
LH: loop header
LB: loop body
LE: loop exit
PB: predicated region body
PF: predicated region fallthrough
CT: control target
= control target key end

     0   :  { %20 = vsyncpa [#allocation3], 0  ;;  %s3049_s0 = inlined_call_operand.vmem [shape: s32[2,8], index: 0, kind: input, shape index: {}]   ;;  %s3050_s1 = inlined_call_operand.vmem [shape: s32[2,1], index: 1, kind: input, shape index: {}]   ;;  %s3051_s2 = inlined_call_operand.vmem [shape: bf16[64,32], index: 2, kind: input, shape index: {}]   ;;  %s3052_s3 = inlined_call_operand.hbm [shape: f32[8,32], index: 3, kind: input, shape index: {}]   ;;  %s3053_s4 = inlined_call_operand.vmem [shape: bf16[2,32,128], index: 4, kind: input, shape index: {}]   ;;  %s3054_s5 = inlined_call_operand.vmem [shape: bf16[2,32,32], index: 5, kind: input, shape index: {}]   ;;  %s3055_s6 = inlined_call_operand.vmem [shape: bf16[2,32,64], index: 6, kind: input, shape index: {}]   ;;  %s3056_s7 = inlined_call_operand.vmem [shape: bf16[2,64,32], index: 7, kind: input, shape index: {}]   ;;  %s3057_s8 = inlined_call_operand.vmem [shape: f32[2,8,128], index: 8, kind: input, shape index: {}]   ;;  %s3058_s9 = inlined_call_operand.hbm [shape: bf16[32,32], index: 9, kind: input, shape index: {}]   ;;  %s3059_s10 = inlined_call_operand.vmem [shape: f32[1,32], index: 10, kind: input, shape index: {}]   ;;  %s3060_s11 = inlined_call_operand.vmem [shape: bf16[32,2], index: 11, kind: input, shape index: {}]   ;;  %s3061_s12 = inlined_call_operand.vmem [shape: f32[1,2], index: 12, kind: input, shape index: {}]   ;;  %s3062_s13 = inlined_call_operand.hbm [shape: f32[2,2], index: 13, kind: output, shape index: {0}]   ;;  %s3063_s14 = inlined_call_operand.hbm [shape: f32[1,1], index: 14, kind: output, shape index: {1}]  }
   0x1   :  { %21 = vsyncpa [#allocation6], 0 }
   0x2   :  { %22 = vsyncpa [#allocation4], 0 }
   0x3   :  { %23 = vsyncpa [#allocation9], 0  ;;  %s35_s15 = sshll.u32 %s3052_s3, 4  ;;  %s2472_s16 = smov [#allocation2]   ;;  %s36_s15 = int_to_ptr.hbm [resolvable:$true] %s35_s15 }
   0x4   :  { %s37_s17 = sshll.u32 %s2472_s16, 4  ;;  %s55_s20 = sshll.u32 %s3058_s9, 4  ;;  %s38_s17 = int_to_ptr.vmem [resolvable:$true] %s37_s17  ;;  %s56_s20 = int_to_ptr.hbm [resolvable:$true] %s55_s20 }
   0x5   :  { %40 = dma.hbm_to_vmem [thread:$0]  %s36_s15, 128, %s38_s17, [#allocation3]  }
   0x6   :  { %s2473_s21 = smov [#allocation5]   ;;  %s2474_s23 = smov 64  }
   0x7   :  { %s57_s22 = sshll.u32 %s2473_s21, 4  ;;  %s2475_s24 = smov 4   ;;  %s58_s22 = int_to_ptr.vmem [resolvable:$true] %s57_s22 }
   0x8   :  { %63 = dma.hbm_to_vmem [thread:$0]  %s56_s20, 256, %s58_s22, [#allocation6], %s2474_s23, %s2474_s23, %s2475_s24  }
   0x9   :  { %2464 = dma.done.wait [#allocation3], 128  }
   0xa   :  { %2465 = vsyncadd [#allocation3], 4294967168 }
   0xb   :  { %2466 = dma.done.wait [#allocation6], 256  }
   0xc   :  { %2467 = vsyncadd [#allocation6], 4294967040  ;;  %v83_v0 = vlaneseq  ;;  %v2577_v2 = vld [vmem:[%s3049_s0] sm:$0x3]  ;;  %v2187_v5 = vld [vmem:[%s3051_s2 + $0x18] sm:$0xff]  ;;  %v2476_v11 = vmov 0.0  }
   0xd   :  { %v85_v3 = vperm.slane %v2577_v2, 0  ;;  %v92_v4 = vperm.slane %v2577_v2, 1  ;;  %153 = vmatpush.bf16.msra.mxu0 %v2187_v5  ;;  %v2186_v6 = vld [vmem:[%s3051_s2 + $0x10] sm:$0xff]  ;;  %v2185_v7 = vld [vmem:[%s3051_s2 + $0x8] sm:$0xff]  ;;  %v2184_v8 = vld [vmem:[%s3051_s2] sm:$0xff]  ;;  %vm145_vm2 = vcmask 523264  }
   0xe   :  { %v2571_v1 = vshrl.u32 %v83_v0, 7  ;;  %v2593_v9 = vand.u32 127, %v83_v0  ;;  %v2189_v20 = vld [vmem:[%s3053_s4 + $0x8] sm:$0xff]  ;;  %v2188_v21 = vld [vmem:[%s3053_s4] sm:$0xff]  ;;  %vm202_vm3 = vcmask 261120   ;;  %s2477_s21 = smov 112  }
   0xf   :  { %212 = vmatpush.bf16.msra.mxu1 %v2189_v20  ;;  %v115_v23 = vld [vmem:[#allocation2] sm:$0xff]  ;;  %s2478_s22 = smov 120   ;;  %s2479_s24 = smov 104   ;;  %vm253_vm4 = vcmask 64512   ;;  %vm80_vm5 = vcmp.ne.s32.totalorder %v2577_v2, 1  ;;  %vm562_vm6 = vcmask 1043456  }
  0x10   :  { %2235 = vset.pattern.permute.xlu0 %v2571_v1  ;;  %v2616_v28 = vld [vmem:[%s3057_s8] sm:$0xff]  ;;  %s2480_s3 = smov 96   ;;  %s2481_s9 = smov 8   ;;  %vm752_vm7 = vcmask 130048   ;;  %vm755_vm8 = vcmask 195584  }
  0x11   :  { %154 = vmatpush.bf16.msra.mxu0 %v2186_v6  ;;  %v189_v29 = vperm.slane %v2616_v28, 0  ;;  %s2482_s25 = smov 16   ;;  %s2483_s26 = smov 24  }
  0x12   :  { %s1973_s17 = sshll.u32 %s3062_s13, 4  ;;  %s1984_s13 = sshll.u32 %s3063_s14, 4  ;;  %s1974_s17 = int_to_ptr.hbm [resolvable:$true] %s1973_s17  ;;  %s1985_s13 = int_to_ptr.hbm [resolvable:$true] %s1984_s13 }
  0x13   :  { %213 = vmatpush.bf16.msra.mxu1 %v2188_v21 }
  0x15   :  { %155 = vmatpush.bf16.msra.mxu0 %v2185_v7 }
  0x18   :  { %90 = vperm.xlu0 %2235, %v85_v3  }
  0x19   :  { %156 = vmatpush.bf16.msra.mxu0 %v2184_v8 }
  0x20   :  { %97 = vperm.xlu0 %2235, %v92_v4  }
  0x8a   :  { %v91_v10 = vpop.permute.xlu0 %90 }
  0x8b   :  { %vm99_vm0 = vcmp.eq.s32.totalorder %v2593_v9, %v91_v10 }
  0x8c   :  { %v2001_v12 = vsel %vm99_vm0, 1.0, %v2476_v11 }
  0x8d   :  { %v105_v14 = vpack.c.bf16 %v2001_v12, %v2001_v12  ;;  %v2665_v12 = vsel %vm80_vm5, 1.0, %v2476_v11 }
  0x8f   :  { %v118_v17 = vunpack.c.l.b16 %v105_v14 }
  0x92   :  { %v98_v13 = vpop.permute.xlu0 %97 }
  0x93   :  { %vm100_vm1 = vcmp.eq.s32.totalorder %v2593_v9, %v98_v13 }
  0x94   :  { %v2002_v15 = vsel %vm100_vm1, 1.0, %v2476_v11 }
  0x95   :  { %v106_v16 = vpack.c.bf16 %v2002_v15, %v2002_v15  ;;  %v2020_v15 = vadd.f32 -1.0, %v2665_v12 }
  0x97   :  { %v119_v18 = vunpack.c.l.b16 %v106_v16  ;;  %v164_v16 = vmul.f32 1e+09, %v2020_v15 }
  0x99   :  { %v120_v19 = vpack.c.b16 %v119_v18, %v118_v17 }
  0x9b   :  { %2019 = vmatmul.msk.bf16.vlgmr.msra.gmra.mxu0 %vm145_vm2, %v120_v19  ;;  %v2672_v19 = vperm.slane %v164_v16, 0 }
 0x118   :  { %v158_v22 = vpop.f32.mrf.mxu0 }
 0x119   :  { %v2606_v25 = vadd.f32 %v158_v22, %v115_v23 }
 0x120   :  { %v160_v24 = vpop.f32.mrf.mxu0 }
 0x121   :  { %v2608_v26 = vadd.f32 %v160_v24, %v115_v23 }
 0x123   :  { %v188_v27 = vpack.c.bf16 %v2608_v26, %v2606_v25 }
 0x125   :  { %2029 = vmatmul.msk.bf16.vlgmr.msra.gmra.mxu1 %vm202_vm3, %v188_v27 }
 0x1a2   :  { %v215_v30 = vpop.f32.mrf.mxu1 }
 0x1a3   :  { %v216_v31 = vadd.f32 %v215_v30, %v189_v29 }
 0x1a5   :  { %228 = vrot.lane.b32.xlu2 %v216_v31, %s2477_s21  ;;  %v240_v34 = vpack.c.bf16 %v216_v31, %v216_v31 }
 0x1a7   :  { %v249_v37 = vunpack.c.l.b16 %v240_v34 }
 0x1a9   :  { %v250_v39 = vpack.c.b16 %v249_v37, %v249_v37 }
 0x1aa   :  { %v217_v32 = vpop.f32.mrf.mxu1 }
 0x1ab   :  { %v218_v33 = vadd.f32 %v217_v32, %v189_v29 }
 0x1ad   :  { %230 = vrot.lane.b32.xlu0 %v218_v33, %s2477_s21  ;;  %224 = vrot.lane.b32.xlu1 %v218_v33, %s2478_s22  ;;  %v241_v35 = vpack.c.bf16 %v218_v33, %v218_v33 }
 0x1ae   :  { %236 = vrot.lane.b32.xlu2 %v218_v33, %s2479_s24  ;;  %v166_v33 = vrot.slane %v164_v16, 1 }
 0x1af   :  { %v274_v36 = vunpack.c.l.b16 %v241_v35 }
 0x1b1   :  { %v2623_v38 = vpack.c.b16 %v274_v36, %v274_v36  ;;  %v2684_v36 = vperm.slane %v166_v33, 0 }
 0x1b5   :  { %276 = vrot.lane.b32.xlu0 %v2623_v38, %s2480_s3  ;;  %222 = vrot.lane.b32.xlu1 %v216_v31, %s2478_s22 }
 0x1b6   :  { %251 = vrot.lane.b32.xlu2 %v250_v39, %s2480_s3 }
 0x1bd   :  { %234 = vrot.lane.b32.xlu1 %v216_v31, %s2479_s24 }
 0x1ff   :  { %v229_v40 = vpop.permute.xlu2 %228 }
 0x200   :  { %v244_v41 = vpack.c.bf16 %v229_v40, %v229_v40 }
 0x202   :  { %v346_v42 = vunpack.c.l.b16 %v244_v41 }
 0x204   :  { %v2630_v43 = vpack.c.b16 %v346_v42, %v346_v42 }
 0x206   :  { %348 = vrot.lane.b32.xlu0 %v2630_v43, %s2480_s3 }
 0x208   :  { %v237_v44 = vpop.permute.xlu2 %236 }
 0x209   :  { %v2636_v51 = vpack.c.bf16 %v237_v44, %v237_v44 }
 0x20b   :  { %v418_v55 = vunpack.c.l.b16 %v2636_v51 }
 0x20d   :  { %v2641_v59 = vpack.c.b16 %v418_v55, %v418_v55 }
 0x210   :  { %v252_v45 = vpop.permute.xlu2 %251 }
 0x211   :  { %v258_v46 = vsel %vm253_vm4, %v252_v45, 0 }
 0x212   :  { %267 = vmatpush.bf16.xpose.msra.mxu2 %v258_v46 }
 0x219   :  { %2030 = vmatmul.msk.bf16.vlgmr.msra.gmra.mxu2 %vm253_vm4, %v240_v34 }
 0x21f   :  { %v231_v47 = vpop.permute.xlu0 %230  ;;  %v225_v48 = vpop.permute.xlu1 %224 }
 0x220   :  { %v243_v49 = vpack.c.bf16 %v225_v48, %v225_v48  ;;  %v245_v61 = vpack.c.bf16 %v231_v47, %v231_v47 }
 0x222   :  { %v322_v50 = vunpack.c.l.b16 %v243_v49  ;;  %v370_v0 = vunpack.c.l.b16 %v245_v61 }
 0x224   :  { %v323_v52 = vpack.c.b16 %v322_v50, %v322_v50  ;;  %v2652_v5 = vpack.c.b16 %v370_v0, %v370_v0 }
 0x226   :  { %324 = vrot.lane.b32.xlu1 %v323_v52, %s2480_s3 }
 0x227   :  { %v277_v53 = vpop.permute.xlu0 %276  ;;  %v223_v54 = vpop.permute.xlu1 %222 }
 0x228   :  { %v242_v56 = vpack.c.bf16 %v223_v54, %v223_v54  ;;  %v282_v57 = vsel %vm253_vm4, %v277_v53, 0 }
 0x229   :  { %291 = vmatpush.bf16.xpose.msra.mxu3 %v282_v57 }
 0x22a   :  { %v298_v58 = vunpack.c.l.b16 %v242_v56 }
 0x22c   :  { %v2643_v60 = vpack.c.b16 %v298_v58, %v298_v58 }
 0x22e   :  { %420 = vrot.lane.b32.xlu1 %v2641_v59, %s2480_s3  ;;  %300 = vrot.lane.b32.xlu2 %v2643_v60, %s2480_s3 }
 0x22f   :  { %v235_v62 = vpop.permute.xlu1 %234 }
 0x230   :  { %v246_v63 = vpack.c.bf16 %v235_v62, %v235_v62  ;;  %2031 = vmatmul.msk.bf16.vlgmr.msra.gmra.mxu3 %vm253_vm4, %v241_v35 }
 0x232   :  { %v394_v3 = vunpack.c.l.b16 %v246_v63 }
 0x234   :  { %v2650_v4 = vpack.c.b16 %v394_v3, %v394_v3 }
 0x236   :  { %621 = vrot.lane.b32.xlu1 %v323_v52, %s2474_s23  ;;  %396 = vrot.lane.b32.xlu0 %v2650_v4, %s2480_s3 }
 0x237   :  { %372 = vrot.lane.b32.xlu2 %v2652_v5, %s2480_s3 }
 0x23e   :  { %557 = vrot.lane.b32.xlu0 %v250_v39, %s2474_s23 }
 0x278   :  { %v349_v6 = vpop.permute.xlu0 %348 }
 0x279   :  { %v354_v7 = vsel %vm253_vm4, %v349_v6, 0 }
 0x27a   :  { %363 = vmatpush.bf16.xpose.msrb.mxu3 %v354_v7 }
 0x281   :  { %2034 = vmatmul.msk.bf16.vlgmr.msrb.gmra.mxu3 %vm253_vm4, %v244_v41 }
 0x288   :  { %v301_v8 = vpop.permute.xlu2 %300 }
 0x289   :  { %v306_v10 = vsel %vm253_vm4, %v301_v8, 0 }
 0x28a   :  { %315 = vmatpush.bf16.xpose.msrb.mxu1 %v306_v10 }
 0x291   :  { %v373_v13 = vpop.permute.xlu2 %372  ;;  %2032 = vmatmul.msk.bf16.vlgmr.msrb.gmra.mxu1 %vm253_vm4, %v242_v56 }
 0x292   :  { %v378_v14 = vsel %vm253_vm4, %v373_v13, 0 }
 0x293   :  { %387 = vmatpush.bf16.xpose.msrb.mxu0 %v378_v14 }
 0x298   :  { %v325_v17 = vpop.permute.xlu1 %324 }
 0x299   :  { %v330_v18 = vsel %vm253_vm4, %v325_v17, 0 }
 0x29a   :  { %2035 = vmatmul.msk.bf16.vlgmr.msrb.gmra.mxu0 %vm253_vm4, %v245_v61  ;;  %339 = vmatpush.bf16.xpose.msrb.mxu2 %v330_v18 }
 0x29c   :  { %v269_v2 = vpop.f32.mrf.mxu2 }
 0x29d   :  { %v441_v20 = vmul.f32 0.35355338, %v269_v2 }
 0x29f   :  { %v453_v21 = vadd.f32 %v2672_v19, %v441_v20 }
 0x2a0   :  { %v421_v22 = vpop.permute.xlu1 %420 }
 0x2a1   :  { %v426_v23 = vsel %vm253_vm4, %v421_v22, 0  ;;  %2033 = vmatmul.msk.bf16.vlgmr.msrb.gmra.mxu2 %vm253_vm4, %v243_v49  ;;  %v461_v24 = vsel %vm253_vm4, %v453_v21, -inf }
 0x2a2   :  { %462 = vmax.xlane.f32.xlu1 %v461_v24  ;;  %435 = vmatpush.bf16.xpose.msra.mxu2 %v426_v23 }
 0x2a4   :  { %v271_v27 = vpop.f32.mrf.mxu2 }
 0x2a8   :  { %v397_v29 = vpop.permute.xlu0 %396  ;;  %v622_v30 = vpop.permute.xlu1 %621 }
 0x2a9   :  { %v402_v31 = vsel %vm253_vm4, %v397_v29, 0  ;;  %v627_v32 = vsel %vm562_vm6, %v622_v30, 0 }
 0x2aa   :  { %411 = vmatpush.bf16.xpose.msra.mxu1 %v402_v31  ;;  %636 = vmatpush.bf16.msrb.mxu2 %v627_v32 }
 0x2b0   :  { %v558_v34 = vpop.permute.xlu0 %557 }
 0x2b1   :  { %v564_v35 = vsel %vm562_vm6, %v558_v34, 0  ;;  %2036 = vmatmul.msk.bf16.vlgmr.msra.gmra.mxu1 %vm253_vm4, %v246_v63  ;;  %2037 = vmatmul.msk.bf16.vlgmr.msra.gmra.mxu2 %vm253_vm4, %v2636_v51 }
 0x2b2   :  { %573 = vmatpush.bf16.msra.mxu3 %v564_v35 }
 0x2b3   :  { %v293_v37 = vpop.f32.mrf.mxu3 }
 0x2b4   :  { %v442_v39 = vmul.f32 0.35355338, %v293_v37 }
 0x2b6   :  { %v454_v40 = vadd.f32 %v2684_v36, %v442_v39 }
 0x2b8   :  { %v464_v41 = vsel %vm253_vm4, %v454_v40, -inf }
 0x2b9   :  { %465 = vmax.xlane.f32.xlu0 %v464_v41 }
 0x2bb   :  { %v295_v42 = vpop.f32.mrf.mxu3 }
 0x304   :  { %v365_v44 = vpop.f32.mrf.mxu3 }
 0x305   :  { %v445_v45 = vmul.f32 0.35355338, %v365_v44 }
 0x307   :  { %v457_v46 = vadd.f32 %v2672_v19, %v445_v45 }
 0x309   :  { %v473_v47 = vsel %vm253_vm4, %v457_v46, -inf }
 0x30a   :  { %474 = vmax.xlane.f32.xlu1 %v473_v47 }
 0x30c   :  { %v367_v48 = vpop.f32.mrf.mxu3 }
 0x30e   :  { %v317_v49 = vpop.f32.mrf.mxu1 }
 0x30f   :  { %v443_v50 = vmul.f32 0.35355338, %v317_v49 }
 0x311   :  { %v455_v51 = vadd.f32 %v2672_v19, %v443_v50 }
 0x313   :  { %v467_v52 = vsel %vm253_vm4, %v455_v51, -inf }
 0x314   :  { %468 = vmax.xlane.f32.xlu2 %v467_v52 }
 0x315   :  { %v463_v58 = vpop.xlane.xlu1 %462 }
 0x316   :  { %v319_v53 = vpop.f32.mrf.mxu1  ;;  %v485_v62 = vsub.f32 %v453_v21, %v463_v58 }
 0x317   :  { %v389_v54 = vpop.f32.mrf.mxu0 }
 0x318   :  { %v446_v55 = vmul.f32 0.35355338, %v389_v54  ;;  %v493_v63 = vmul.f32 1.442695, %v485_v62 }
 0x31a   :  { %v458_v56 = vadd.f32 %v2684_v36, %v446_v55  ;;  %2270 = vpow2.f32 %v493_v63 }
 0x31c   :  { %v476_v57 = vsel %vm253_vm4, %v458_v56, -inf }
 0x31d   :  { %477 = vmax.xlane.f32.xlu0 %v476_v57 }
 0x31f   :  { %v391_v61 = vpop.f32.mrf.mxu0 }
 0x320   :  { %v2696_v14 = vpop.eup %2270 }
 0x321   :  { %v509_v18 = vsel %vm253_vm4, %v2696_v14, 0.0 }
 0x324   :  { %v341_v0 = vpop.f32.mrf.mxu2 }
 0x325   :  { %v444_v3 = vmul.f32 0.35355338, %v341_v0 }
 0x327   :  { %v456_v6 = vadd.f32 %v2684_v36, %v444_v3 }
 0x329   :  { %v470_v7 = vsel %vm253_vm4, %v456_v6, -inf }
 0x32a   :  { %471 = vmax.xlane.f32.xlu2 %v470_v7 }
 0x32c   :  { %v343_v8 = vpop.f32.mrf.mxu2  ;;  %v466_v10 = vpop.xlane.xlu0 %465 }
 0x32d   :  { %v486_v13 = vsub.f32 %v454_v40, %v466_v10 }
 0x32e   :  { %v413_v15 = vpop.f32.mrf.mxu1 }
 0x32f   :  { %v495_v16 = vmul.f32 1.442695, %v486_v13  ;;  %v447_v17 = vmul.f32 0.35355338, %v413_v15 }
 0x331   :  { %600 = vrot.lane.b32.xlu0 %v2643_v60, %s2474_s23  ;;  %v459_v2 = vadd.f32 %v2672_v19, %v447_v17  ;;  %2272 = vpow2.f32 %v495_v16 }
 0x332   :  { %510 = vadd.xlane.f32.xlu2 %v509_v18 }
 0x333   :  { %v479_v20 = vsel %vm253_vm4, %v459_v2, -inf }
 0x334   :  { %v437_v21 = vpop.f32.mrf.mxu2  ;;  %480 = vmax.xlane.f32.xlu1 %v479_v20 }
 0x335   :  { %v448_v22 = vmul.f32 0.35355338, %v437_v21 }
 0x336   :  { %v415_v23 = vpop.f32.mrf.mxu1 }
 0x337   :  { %v460_v24 = vadd.f32 %v2684_v36, %v448_v22  ;;  %v2705_v27 = vpop.eup %2272 }
 0x338   :  { %v512_v29 = vsel %vm253_vm4, %v2705_v27, 0.0 }
 0x339   :  { %642 = vrot.lane.b32.xlu0 %v2630_v43, %s2474_s23  ;;  %v482_v60 = vsel %vm253_vm4, %v460_v24, -inf }
 0x33a   :  { %483 = vmax.xlane.f32.xlu2 %v482_v60 }
 0x33c   :  { %v439_v30 = vpop.f32.mrf.mxu2  ;;  %513 = vadd.xlane.f32.xlu1 %v512_v29 }
 0x352   :  { %579 = vrot.lane.b32.xlu2 %v2623_v38, %s2474_s23 }
 0x37d   :  { %v475_v31 = vpop.xlane.xlu1 %474 }
 0x37e   :  { %v489_v32 = vsub.f32 %v457_v46, %v475_v31 }
 0x380   :  { %v501_v33 = vmul.f32 1.442695, %v489_v32 }
 0x382   :  { %2274 = vpow2.f32 %v501_v33 }
 0x387   :  { %v469_v34 = vpop.xlane.xlu2 %468 }
 0x388   :  { %v2714_v35 = vpop.eup %2274  ;;  %v487_v37 = vsub.f32 %v455_v51, %v469_v34 }
 0x389   :  { %v521_v43 = vsel %vm253_vm4, %v2714_v35, 0.0 }
 0x38a   :  { %v497_v39 = vmul.f32 1.442695, %v487_v37  ;;  %522 = vadd.xlane.f32.xlu1 %v521_v43 }
 0x38c   :  { %2276 = vpow2.f32 %v497_v39 }
 0x390   :  { %v478_v40 = vpop.xlane.xlu0 %477 }
 0x391   :  { %v490_v41 = vsub.f32 %v458_v56, %v478_v40 }
 0x392   :  { %v2277_v42 = vpop.eup %2276 }
 0x393   :  { %v503_v44 = vmul.f32 1.442695, %v490_v41  ;;  %v515_v38 = vsel %vm253_vm4, %v2277_v42, 0.0 }
 0x394   :  { %516 = vadd.xlane.f32.xlu2 %v515_v38 }
 0x395   :  { %2278 = vpow2.f32 %v503_v44 }
 0x39b   :  { %v2719_v45 = vpop.eup %2278 }
 0x39c   :  { %v524_v46 = vsel %vm253_vm4, %v2719_v45, 0.0 }
 0x39d   :  { %525 = vadd.xlane.f32.xlu2 %v524_v46  ;;  %v472_v47 = vpop.xlane.xlu2 %471 }
 0x39e   :  { %v488_v48 = vsub.f32 %v456_v6, %v472_v47 }
 0x3a0   :  { %v499_v49 = vmul.f32 1.442695, %v488_v48 }
 0x3a2   :  { %2280 = vpow2.f32 %v499_v49 }
 0x3a3   :  { %v601_v50 = vpop.permute.xlu0 %600 }
 0x3a4   :  { %v606_v51 = vsel %vm562_vm6, %v601_v50, 0 }
 0x3a5   :  { %615 = vmatpush.bf16.msrb.mxu1 %v606_v51  ;;  %v511_v52 = vpop.xlane.xlu2 %510 }
 0x3a6   :  { %2282 = vrcp.f32 %v511_v52 }
 0x3a7   :  { %v481_v53 = vpop.xlane.xlu1 %480 }
 0x3a8   :  { %v2281_v54 = vpop.eup %2280  ;;  %v491_v55 = vsub.f32 %v459_v2, %v481_v53 }
 0x3a9   :  { %v518_v56 = vsel %vm253_vm4, %v2281_v54, 0.0 }
 0x3aa   :  { %v505_v57 = vmul.f32 1.442695, %v491_v55  ;;  %519 = vadd.xlane.f32.xlu0 %v518_v56 }
 0x3ab   :  { %v643_v58 = vpop.permute.xlu0 %642 }
 0x3ac   :  { %v2283_v61 = vpop.eup %2282  ;;  %2284 = vpow2.f32 %v505_v57  ;;  %v648_v62 = vsel %vm562_vm6, %v643_v58, 0 }
 0x3ad   :  { %v541_v63 = vmul.f32 %v2283_v61, %v2696_v14  ;;  %657 = vmatpush.bf16.msrb.mxu3 %v648_v62  ;;  %v484_v0 = vpop.xlane.xlu2 %483 }
 0x3ae   :  { %v492_v3 = vsub.f32 %v460_v24, %v484_v0 }
 0x3af   :  { %v549_v6 = vpack.c.bf16 %v541_v63, %v541_v63  ;;  %v514_v7 = vpop.xlane.xlu1 %513 }
 0x3b0   :  { %v507_v8 = vmul.f32 1.442695, %v492_v3  ;;  %2286 = vrcp.f32 %v514_v7 }
 0x3b1   :  { %2038 = vmatmul.msk.bf16.vlgmr.msra.gmra.mxu3 %vm253_vm4, %v549_v6 }
 0x3b2   :  { %v2285_v10 = vpop.eup %2284  ;;  %2288 = vpow2.f32 %v507_v8 }
 0x3b3   :  { %v527_v13 = vsel %vm253_vm4, %v2285_v10, 0.0 }
 0x3b4   :  { %528 = vadd.xlane.f32.xlu1 %v527_v13 }
 0x3b5   :  { %705 = vrot.lane.b32.xlu2 %v2641_v59, %s2474_s23  ;;  %v580_v15 = vpop.permute.xlu2 %579 }
 0x3b6   :  { %v2287_v16 = vpop.eup %2286  ;;  %v585_v14 = vsel %vm562_vm6, %v580_v15, 0 }
 0x3b7   :  { %v542_v17 = vmul.f32 %v2287_v16, %v2705_v27  ;;  %594 = vmatpush.bf16.msra.mxu0 %v585_v14  ;;  %v2191_v16 = vld [vmem:[%s3054_s5 + $0x8] sm:$0xff]  ;;  %v2190_v14 = vld [vmem:[%s3054_s5] sm:$0xff] }
 0x3b8   :  { %v2289_v18 = vpop.eup %2288  ;;  %781 = vmatpush.bf16.msra.mxu3 %v2191_v16 }
 0x3b9   :  { %v550_v2 = vpack.c.bf16 %v542_v17, %v542_v17  ;;  %v530_v20 = vsel %vm253_vm4, %v2289_v18, 0.0 }
 0x3ba   :  { %531 = vadd.xlane.f32.xlu0 %v530_v20 }
 0x3bb   :  { %2039 = vmatmul.msk.bf16.vlgmr.msra.gmra.mxu0 %vm253_vm4, %v550_v2 }
 0x3bc   :  { %782 = vmatpush.bf16.msra.mxu3 %v2190_v14 }
 0x3cd   :  { %663 = vrot.lane.b32.xlu1 %v2652_v5, %s2474_s23 }
 0x3ce   :  { %684 = vrot.lane.b32.xlu0 %v2650_v4, %s2474_s23 }
 0x3fd   :  { %v523_v59 = vpop.xlane.xlu1 %522 }
 0x3fe   :  { %2290 = vrcp.f32 %v523_v59 }
 0x404   :  { %v2291_v21 = vpop.eup %2290 }
 0x405   :  { %v545_v22 = vmul.f32 %v2291_v21, %v2714_v35 }
 0x407   :  { %v553_v23 = vpack.c.bf16 %v545_v22, %v545_v22  ;;  %v517_v24 = vpop.xlane.xlu2 %516 }
 0x408   :  { %2292 = vrcp.f32 %v517_v24 }
 0x409   :  { %2042 = vmatmul.msk.bf16.vlgmr.msrb.gmra.mxu3 %vm253_vm4, %v553_v23 }
 0x40e   :  { %v2293_v27 = vpop.eup %2292 }
 0x40f   :  { %v543_v60 = vmul.f32 %v2293_v27, %v2277_v42 }
 0x410   :  { %v526_v29 = vpop.xlane.xlu2 %525 }
 0x411   :  { %v551_v30 = vpack.c.bf16 %v543_v60, %v543_v60 }
 0x413   :  { %2040 = vmatmul.msk.bf16.vlgmr.msrb.gmra.mxu1 %vm253_vm4, %v551_v30 }
 0x418   :  { %v706_v5 = vpop.permute.xlu2 %705 }
 0x419   :  { %v711_v31 = vsel %vm562_vm6, %v706_v5, 0 }
 0x41a   :  { %720 = vmatpush.bf16.msra.mxu2 %v711_v31 }
 0x41d   :  { %v520_v4 = vpop.xlane.xlu0 %519 }
 0x41e   :  { %2294 = vrcp.f32 %v520_v4 }
 0x424   :  { %v2295_v32 = vpop.eup %2294 }
 0x425   :  { %v544_v33 = vmul.f32 %v2295_v32, %v2281_v54  ;;  %v759_v32 = vperm.slane %v2616_v28, 1 }
 0x427   :  { %v552_v34 = vpack.c.bf16 %v544_v33, %v544_v33  ;;  %v529_v37 = vpop.xlane.xlu1 %528 }
 0x429   :  { %2041 = vmatmul.msk.bf16.vlgmr.msrb.gmra.mxu2 %vm253_vm4, %v552_v34 }
 0x42d   :  { %v532_v35 = vpop.xlane.xlu0 %531 }
 0x42e   :  { %2296 = vrcp.f32 %v532_v35 }
 0x42f   :  { %2298 = vrcp.f32 %v526_v29 }
 0x430   :  { %2300 = vrcp.f32 %v529_v37 }
 0x434   :  { %v2297_v43 = vpop.eup %2296  ;;  %v575_v39 = vpop.f32.mrf.mxu3 }
 0x435   :  { %v548_v40 = vmul.f32 %v2297_v43, %v2289_v18  ;;  %v2299_v44 = vpop.eup %2298 }
 0x436   :  { %v2301_v38 = vpop.eup %2300  ;;  %v546_v47 = vmul.f32 %v2299_v44, %v2719_v45 }
 0x437   :  { %v556_v41 = vpack.c.bf16 %v548_v40, %v548_v40  ;;  %v547_v48 = vmul.f32 %v2301_v38, %v2285_v10 }
 0x438   :  { %v596_v42 = vpop.f32.mrf.mxu0  ;;  %v554_v54 = vpack.c.bf16 %v546_v47, %v546_v47 }
 0x439   :  { %2045 = vmatmul.msk.bf16.vlgmr.msra.gmra.mxu2 %vm253_vm4, %v556_v41  ;;  %v555_v55 = vpack.c.bf16 %v547_v48, %v547_v48 }
 0x43c   :  { %v577_v46 = vpop.f32.mrf.mxu3 }
 0x43f   :  { %v664_v49 = vpop.permute.xlu1 %663 }
 0x440   :  { %v669_v50 = vsel %vm562_vm6, %v664_v49, 0  ;;  %v598_v51 = vpop.f32.mrf.mxu0  ;;  %v685_v52 = vpop.permute.xlu0 %684 }
 0x441   :  { %v690_v53 = vsel %vm562_vm6, %v685_v52, 0  ;;  %678 = vmatpush.bf16.msrb.mxu0 %v669_v50 }
 0x442   :  { %699 = vmatpush.bf16.msra.mxu1 %v690_v53 }
 0x444   :  { %2043 = vmatmul.msk.bf16.vlgmr.msrb.gmra.mxu0 %vm253_vm4, %v554_v54 }
 0x445   :  { %2044 = vmatmul.msk.bf16.vlgmr.msra.gmra.mxu1 %vm253_vm4, %v555_v55 }
 0x48c   :  { %v659_v56 = vpop.f32.mrf.mxu3 }
 0x490   :  { %v617_v57 = vpop.f32.mrf.mxu1 }
 0x494   :  { %v661_v58 = vpop.f32.mrf.mxu3 }
 0x495   :  { %v2193_v58 = vld [vmem:[%s3055_s6 + $0x8] sm:$0xff] }
 0x496   :  { %871 = vmatpush.bf16.msra.mxu0 %v2193_v58 }
 0x498   :  { %v619_v45 = vpop.f32.mrf.mxu1 }
 0x4ac   :  { %v638_v61 = vpop.f32.mrf.mxu2 }
 0x4ad   :  { %v2236_v62 = vpack.i.bf16 %v638_v61, %v617_v57 }
 0x4af   :  { %2237 = vrot.lane.b32.xlu2 %v2236_v62, %s2481_s9 }
 0x4b4   :  { %v640_v63 = vpop.f32.mrf.mxu2 }
 0x4b5   :  { %v2192_v63 = vld [vmem:[%s3055_s6] sm:$0xff] }
 0x4b6   :  { %872 = vmatpush.bf16.msra.mxu0 %v2192_v63 }
 0x4bc   :  { %v722_v0 = vpop.f32.mrf.mxu2 }
 0x4c1   :  { %v680_v3 = vpop.f32.mrf.mxu0 }
 0x4c2   :  { %v2241_v6 = vpack.i.bf16 %v680_v3, %v659_v56  ;;  %v701_v7 = vpop.f32.mrf.mxu1 }
 0x4c3   :  { %v2246_v8 = vpack.i.bf16 %v722_v0, %v701_v7 }
 0x4c4   :  { %2242 = vrot.lane.b32.xlu0 %v2241_v6, %s2482_s25  ;;  %v724_v10 = vpop.f32.mrf.mxu2 }
 0x4c5   :  { %2247 = vrot.lane.b32.xlu1 %v2246_v8, %s2483_s26 }
 0x4c9   :  { %v682_v13 = vpop.f32.mrf.mxu0 }
 0x4ca   :  { %v703_v15 = vpop.f32.mrf.mxu1 }
 0x509   :  { %v2238_v17 = vpop.permute.xlu2 %2237 }
 0x50a   :  { %v2240_v18 = vunpack.i.h.bf16 %v2238_v17  ;;  %v2239_v2 = vunpack.i.l.bf16 %v2238_v17 }
 0x50c   :  { %v751_v23 = vsel %vm253_vm4, %v596_v42, %v2240_v18  ;;  %v750_v24 = vsel %vm253_vm4, %v575_v39, %v2239_v2  ;;  %v2484_v42 = vmov 32.0  }
 0x50d   :  { %2302 = vrcp.f32 %v2484_v42 }
 0x513   :  { %v2303_v44 = vpop.eup %2302 }
 0x514   :  { %v798_v38 = vmul.f32 32.0, %v2303_v44  ;;  %vm802_vm9 = vweird.f32 %v2303_v44 }
 0x516   :  { %v799_v46 = vsub.f32 1.0, %v798_v38 }
 0x518   :  { %v800_v47 = vmul.f32 %v2303_v44, %v799_v46 }
 0x51a   :  { %v801_v48 = vadd.f32 %v2303_v44, %v800_v47 }
 0x51c   :  { %v2771_v49 = vsel %vm802_vm9, %v2303_v44, %v801_v48 }
 0x536   :  { %v2243_v20 = vpop.permute.xlu0 %2242 }
 0x537   :  { %v2245_v59 = vunpack.i.h.bf16 %v2243_v20  ;;  %v2244_v21 = vunpack.i.l.bf16 %v2243_v20  ;;  %v2248_v22 = vpop.permute.xlu1 %2247 }
 0x538   :  { %v2250_v27 = vunpack.i.h.bf16 %v2248_v22  ;;  %v2249_v60 = vunpack.i.l.bf16 %v2248_v22 }
 0x539   :  { %v754_v29 = vsel %vm752_vm7, %v751_v23, %v2245_v59  ;;  %v753_v30 = vsel %vm752_vm7, %v750_v24, %v2244_v21  ;;  %v842_v21 = vperm.slane %v2616_v28, 2 }
 0x53a   :  { %v756_v5 = vsel %vm755_vm8, %v753_v30, %v2249_v60  ;;  %v757_v31 = vsel %vm755_vm8, %v754_v29, %v2250_v27  ;;  %v845_v27 = vperm.slane %v2616_v28, 3 }
 0x53b   :  { %v758_v4 = vpack.c.bf16 %v757_v31, %v756_v5 }
 0x53d   :  { %2054 = vmatmul.msk.bf16.vlgmr.msra.gmra.mxu3 %vm202_vm3, %v758_v4 }
 0x5c0   :  { %v784_v33 = vpop.f32.mrf.mxu3 }
 0x5c1   :  { %v785_v34 = vadd.f32 %v784_v33, %v759_v32  ;;  %v2196_v33 = vld [vmem:[%s3056_s7 + $0x10] sm:$0xff] }
 0x5c3   :  { %v789_v35 = vadd.f32 %v785_v34, %v2606_v25  ;;  %v2195_v34 = vld [vmem:[%s3056_s7 + $0x8] sm:$0xff] }
 0x5c5   :  { %v791_v37 = vsel %vm202_vm3, %v789_v35, 0.0 }
 0x5c6   :  { %792 = vadd.xlane.f32.xlu2 %v791_v37  ;;  %v849_v37 = vperm.slane %v2616_v28, 4 }
 0x5c8   :  { %v786_v43 = vpop.f32.mrf.mxu3 }
 0x5c9   :  { %v787_v39 = vadd.f32 %v786_v43, %v759_v32  ;;  %v2197_v32 = vld [vmem:[%s3056_s7 + $0x18] sm:$0xff] }
 0x5ca   :  { %930 = vmatpush.bf16.msrb.mxu1 %v2197_v32 }
 0x5cb   :  { %v790_v40 = vadd.f32 %v787_v39, %v2608_v26 }
 0x5cd   :  { %v794_v41 = vsel %vm202_vm3, %v790_v40, 0.0 }
 0x5ce   :  { %795 = vadd.xlane.f32.xlu0 %v794_v41  ;;  %931 = vmatpush.bf16.msrb.mxu1 %v2196_v33 }
 0x5d2   :  { %932 = vmatpush.bf16.msrb.mxu1 %v2195_v34 }
 0x639   :  { %v793_v25 = vpop.xlane.xlu2 %792 }
 0x63a   :  { %v804_v50 = vmul.f32 %v2771_v49, %v793_v25 }
 0x63c   :  { %v806_v51 = vsub.f32 %v789_v35, %v804_v50  ;;  %v2194_v35 = vld [vmem:[%s3056_s7] sm:$0xff] }
 0x63d   :  { %933 = vmatpush.bf16.msrb.mxu1 %v2194_v35 }
 0x63e   :  { %v808_v52 = vmul.f32 %v806_v51, %v806_v51 }
 0x640   :  { %v810_v26 = vsel %vm202_vm3, %v808_v52, 0.0 }
 0x641   :  { %v796_v53 = vpop.xlane.xlu0 %795  ;;  %811 = vadd.xlane.f32.xlu1 %v810_v26 }
 0x642   :  { %v805_v54 = vmul.f32 %v2771_v49, %v796_v53 }
 0x644   :  { %v807_v55 = vsub.f32 %v790_v40, %v805_v54 }
 0x646   :  { %v809_v56 = vmul.f32 %v807_v55, %v807_v55 }
 0x648   :  { %v813_v57 = vsel %vm202_vm3, %v809_v56, 0.0 }
 0x649   :  { %814 = vadd.xlane.f32.xlu2 %v813_v57 }
 0x6b4   :  { %v812_v45 = vpop.xlane.xlu1 %811 }
 0x6b5   :  { %v816_v61 = vmul.f32 %v812_v45, %v2771_v49 }
 0x6b7   :  { %v818_v62 = vadd.f32 1e-05, %v816_v61 }
 0x6b9   :  { %2304 = vrsqrt.f32 %v818_v62  ;;  %vm826_vm11 = vweird.f32 %v818_v62 }
 0x6bc   :  { %v815_v0 = vpop.xlane.xlu2 %814 }
 0x6bd   :  { %v817_v3 = vmul.f32 %v815_v0, %v2771_v49 }
 0x6bf   :  { %v2305_v6 = vpop.eup %2304  ;;  %v819_v7 = vadd.f32 1e-05, %v817_v3 }
 0x6c0   :  { %v821_v8 = vmul.f32 %v2305_v6, %v818_v62  ;;  %vm827_vm10 = vweird.f32 %v2305_v6  ;;  %v898_v62 = vperm.slane %v2616_v28, 5 }
 0x6c1   :  { %2306 = vrsqrt.f32 %v819_v7  ;;  %vm828_vm12 = vmor %vm826_vm11, %vm827_vm10  ;;  %vm836_vm14 = vweird.f32 %v819_v7 }
 0x6c2   :  { %v822_v10 = vmul.f32 %v2305_v6, %v821_v8 }
 0x6c4   :  { %v823_v13 = vmul.f32 0.5, %v822_v10 }
 0x6c6   :  { %v824_v15 = vsub.f32 1.5, %v823_v13 }
 0x6c7   :  { %v2307_v16 = vpop.eup %2306 }
 0x6c8   :  { %v825_v14 = vmul.f32 %v2305_v6, %v824_v15  ;;  %v831_v17 = vmul.f32 %v2307_v16, %v819_v7  ;;  %vm837_vm13 = vweird.f32 %v2307_v16 }
 0x6c9   :  { %vm838_vm15 = vmor %vm836_vm14, %vm837_vm13 }
 0x6ca   :  { %v832_v18 = vmul.f32 %v2307_v16, %v831_v17  ;;  %v829_v2 = vsel %vm828_vm12, %v2305_v6, %v825_v14 }
 0x6cb   :  { %v840_v22 = vmul.f32 %v829_v2, %v806_v51 }
 0x6cc   :  { %v833_v20 = vmul.f32 0.5, %v832_v18 }
 0x6cd   :  { %v843_v60 = vmul.f32 %v842_v21, %v840_v22 }
 0x6ce   :  { %v834_v59 = vsub.f32 1.5, %v833_v20 }
 0x6cf   :  { %v846_v5 = vadd.f32 %v845_v27, %v843_v60 }
 0x6d0   :  { %v835_v23 = vmul.f32 %v2307_v16, %v834_v59 }
 0x6d2   :  { %v839_v24 = vsel %vm838_vm15, %v2307_v16, %v835_v23  ;;  %v2199_v23 = vld [vmem:[%s3053_s4 + $0x18] sm:$0xff]  ;;  %vm1806_vm15 = vcmask 58368  }
 0x6d3   :  { %v841_v29 = vmul.f32 %v839_v24, %v807_v55  ;;  %1041 = vmatpush.bf16.msrb.mxu2 %v2199_v23 }
 0x6d5   :  { %v844_v30 = vmul.f32 %v842_v21, %v841_v29  ;;  %v2198_v29 = vld [vmem:[%s3053_s4 + $0x10] sm:$0xff] }
 0x6d7   :  { %v847_v31 = vadd.f32 %v845_v27, %v844_v30  ;;  %1042 = vmatpush.bf16.msrb.mxu2 %v2198_v29 }
 0x6d9   :  { %v848_v4 = vpack.c.bf16 %v847_v31, %v846_v5 }
 0x6db   :  { %2063 = vmatmul.msk.bf16.vlgmr.msra.gmra.mxu0 %vm202_vm3, %v848_v4 }
 0x758   :  { %v874_v43 = vpop.f32.mrf.mxu0 }
 0x759   :  { %v875_v39 = vadd.f32 %v874_v43, %v849_v37 }
 0x75b   :  { %v881_v40 = vmul.f32 0.044715, %v875_v39  ;;  %v879_v55 = vmul.f32 0.5, %v875_v39 }
 0x75d   :  { %v883_v41 = vmul.f32 %v881_v40, %v875_v39 }
 0x75f   :  { %v885_v42 = vmul.f32 %v883_v41, %v875_v39 }
 0x760   :  { %v876_v44 = vpop.f32.mrf.mxu0 }
 0x761   :  { %v887_v38 = vadd.f32 %v885_v42, %v875_v39  ;;  %v877_v46 = vadd.f32 %v876_v44, %v849_v37 }
 0x763   :  { %v882_v47 = vmul.f32 0.044715, %v877_v46  ;;  %v889_v48 = vmul.f32 0.7978846, %v887_v38  ;;  %v880_v56 = vmul.f32 0.5, %v877_v46  ;;  %v986_v38 = vperm.slane %v2616_v28, 6 }
 0x765   :  { %v884_v25 = vmul.f32 %v882_v47, %v877_v46  ;;  %2308 = vtanh.f32 %v889_v48 }
 0x767   :  { %v886_v50 = vmul.f32 %v884_v25, %v877_v46  ;;  %v989_v25 = vperm.slane %v2616_v28, 7 }
 0x769   :  { %v888_v51 = vadd.f32 %v886_v50, %v877_v46 }
 0x76b   :  { %v890_v52 = vmul.f32 0.7978846, %v888_v51  ;;  %v2309_v26 = vpop.eup %2308 }
 0x76c   :  { %v893_v53 = vadd.f32 1.0, %v2309_v26 }
 0x76d   :  { %2310 = vtanh.f32 %v890_v52 }
 0x76e   :  { %v895_v58 = vmul.f32 %v893_v53, %v879_v55  ;;  %v2829_v55 = vld [vmem:[%s3057_s8 + $0x8] sm:$0xff]  ;;  %s2486_s8 = smov [#allocation7]  }
 0x773   :  { %v2311_v54 = vpop.eup %2310 }
 0x774   :  { %v894_v57 = vadd.f32 1.0, %v2311_v54 }
 0x776   :  { %v896_v45 = vmul.f32 %v894_v57, %v880_v56  ;;  %v1019_v56 = vperm.slane %v2829_v55, 0 }
 0x778   :  { %v897_v61 = vpack.c.bf16 %v896_v45, %v895_v58 }
 0x77a   :  { %2080 = vmatmul.msk.bf16.vlgmr.msrb.gmra.mxu1 %vm145_vm2, %v897_v61 }
 0x7f7   :  { %v935_v63 = vpop.f32.mrf.mxu1 }
 0x7f8   :  { %v936_v0 = vadd.f32 %v935_v63, %v898_v62 }
 0x7fa   :  { %v940_v3 = vadd.f32 %v936_v0, %v846_v5 }
 0x7fc   :  { %v942_v6 = vsel %vm202_vm3, %v940_v3, 0.0 }
 0x7fd   :  { %943 = vadd.xlane.f32.xlu0 %v942_v6 }
 0x7ff   :  { %v937_v7 = vpop.f32.mrf.mxu1 }
 0x800   :  { %v938_v8 = vadd.f32 %v937_v7, %v898_v62 }
 0x802   :  { %v941_v10 = vadd.f32 %v938_v8, %v847_v31 }
 0x804   :  { %v945_v13 = vsel %vm202_vm3, %v941_v10, 0.0 }
 0x805   :  { %946 = vadd.xlane.f32.xlu1 %v945_v13 }
 0x870   :  { %v944_v15 = vpop.xlane.xlu0 %943 }
 0x871   :  { %v948_v16 = vmul.f32 %v944_v15, %v2771_v49 }
 0x873   :  { %v950_v14 = vsub.f32 %v940_v3, %v948_v16 }
 0x875   :  { %v952_v17 = vmul.f32 %v950_v14, %v950_v14 }
 0x877   :  { %v954_v18 = vsel %vm202_vm3, %v952_v17, 0.0 }
 0x878   :  { %v947_v2 = vpop.xlane.xlu1 %946  ;;  %955 = vadd.xlane.f32.xlu2 %v954_v18 }
 0x879   :  { %v949_v20 = vmul.f32 %v947_v2, %v2771_v49 }
 0x87b   :  { %v951_v59 = vsub.f32 %v941_v10, %v949_v20 }
 0x87d   :  { %v953_v21 = vmul.f32 %v951_v59, %v951_v59 }
 0x87f   :  { %v957_v22 = vsel %vm202_vm3, %v953_v21, 0.0 }
 0x880   :  { %958 = vadd.xlane.f32.xlu0 %v957_v22 }
 0x8eb   :  { %v956_v24 = vpop.xlane.xlu2 %955 }
 0x8ec   :  { %v960_v27 = vmul.f32 %v956_v24, %v2771_v49 }
 0x8ee   :  { %v962_v60 = vadd.f32 1e-05, %v960_v27 }
 0x8f0   :  { %2312 = vrsqrt.f32 %v962_v60  ;;  %vm970_vm1 = vweird.f32 %v962_v60 }
 0x8f3   :  { %v959_v30 = vpop.xlane.xlu0 %958 }
 0x8f4   :  { %v961_v5 = vmul.f32 %v959_v30, %v2771_v49 }
 0x8f6   :  { %v2313_v31 = vpop.eup %2312  ;;  %v963_v4 = vadd.f32 1e-05, %v961_v5 }
 0x8f7   :  { %v965_v32 = vmul.f32 %v2313_v31, %v962_v60  ;;  %vm971_vm0 = vweird.f32 %v2313_v31 }
 0x8f8   :  { %2314 = vrsqrt.f32 %v963_v4  ;;  %vm972_vm5 = vmor %vm970_vm1, %vm971_vm0  ;;  %vm980_vm10 = vweird.f32 %v963_v4 }
 0x8f9   :  { %v966_v33 = vmul.f32 %v2313_v31, %v965_v32 }
 0x8fb   :  { %v967_v34 = vmul.f32 0.5, %v966_v33 }
 0x8fd   :  { %v968_v35 = vsub.f32 1.5, %v967_v34 }
 0x8fe   :  { %v2315_v37 = vpop.eup %2314 }
 0x8ff   :  { %v969_v43 = vmul.f32 %v2313_v31, %v968_v35  ;;  %v975_v39 = vmul.f32 %v2315_v37, %v963_v4  ;;  %vm981_vm9 = vweird.f32 %v2315_v37 }
 0x900   :  { %vm982_vm11 = vmor %vm980_vm10, %vm981_vm9 }
 0x901   :  { %v976_v40 = vmul.f32 %v2315_v37, %v975_v39  ;;  %v973_v41 = vsel %vm972_vm5, %v2313_v31, %v969_v43 }
 0x902   :  { %v984_v46 = vmul.f32 %v973_v41, %v950_v14 }
 0x903   :  { %v977_v42 = vmul.f32 0.5, %v976_v40 }
 0x904   :  { %v987_v50 = vmul.f32 %v986_v38, %v984_v46 }
 0x905   :  { %v978_v44 = vsub.f32 1.5, %v977_v42 }
 0x906   :  { %v2819_v26 = vadd.f32 %v989_v25, %v987_v50 }
 0x907   :  { %v979_v47 = vmul.f32 %v2315_v37, %v978_v44 }
 0x909   :  { %v983_v48 = vsel %vm982_vm11, %v2315_v37, %v979_v47 }
 0x90a   :  { %v985_v51 = vmul.f32 %v983_v48, %v951_v59 }
 0x90c   :  { %v988_v52 = vmul.f32 %v986_v38, %v985_v51 }
 0x90e   :  { %v2821_v53 = vadd.f32 %v989_v25, %v988_v52 }
 0x910   :  { %v1018_v54 = vpack.c.bf16 %v2821_v53, %v2819_v26 }
 0x912   :  { %2110 = vmatmul.msk.bf16.vlgmr.msrb.gmra.mxu2 %vm202_vm3, %v1018_v54 }
 0x995   :  { %v1044_v28 = vpop.f32.mrf.mxu2 }
 0x996   :  { %v1045_v57 = vadd.f32 %v1044_v28, %v1019_v56 }
 0x998   :  { %1057 = vrot.lane.b32.xlu0 %v1045_v57, %s2477_s21  ;;  %1051 = vrot.lane.b32.xlu2 %v1045_v57, %s2478_s22  ;;  %v1069_v63 = vpack.c.bf16 %v1045_v57, %v1045_v57 }
 0x99a   :  { %v1078_v3 = vunpack.c.l.b16 %v1069_v63 }
 0x99c   :  { %v1079_v6 = vpack.c.b16 %v1078_v3, %v1078_v3 }
 0x99d   :  { %v1046_v58 = vpop.f32.mrf.mxu2 }
 0x99e   :  { %v1047_v45 = vadd.f32 %v1046_v58, %v1019_v56 }
 0x9a0   :  { %1053 = vrot.lane.b32.xlu1 %v1047_v45, %s2478_s22  ;;  %1059 = vrot.lane.b32.xlu0 %v1047_v45, %s2477_s21  ;;  %v1070_v61 = vpack.c.bf16 %v1047_v45, %v1047_v45  ;;  %s2487_s22 = smov [#allocation8]  }
 0x9a1   :  { %1063 = vrot.lane.b32.xlu2 %v1045_v57, %s2479_s24 }
 0x9a2   :  { %v1102_v62 = vunpack.c.l.b16 %v1070_v61 }
 0x9a4   :  { %v2837_v0 = vpack.c.b16 %v1102_v62, %v1102_v62 }
 0x9a8   :  { %1065 = vrot.lane.b32.xlu1 %v1047_v45, %s2479_s24 }
 0x9a9   :  { %1104 = vrot.lane.b32.xlu2 %v2837_v0, %s2480_s3 }
 0x9b0   :  { %1080 = vrot.lane.b32.xlu1 %v1079_v6, %s2480_s3 }
 0x9f2   :  { %v1052_v7 = vpop.permute.xlu2 %1051 }
 0x9f3   :  { %v1071_v8 = vpack.c.bf16 %v1052_v7, %v1052_v7 }
 0x9f5   :  { %v1126_v10 = vunpack.c.l.b16 %v1071_v8 }
 0x9f7   :  { %v2843_v13 = vpack.c.b16 %v1126_v10, %v1126_v10 }
 0x9f9   :  { %1128 = vrot.lane.b32.xlu1 %v2843_v13, %s2480_s3 }
 0x9fb   :  { %v1064_v15 = vpop.permute.xlu2 %1063 }
 0x9fc   :  { %v1075_v31 = vpack.c.bf16 %v1064_v15, %v1064_v15 }
 0x9fe   :  { %v1222_v34 = vunpack.c.l.b16 %v1075_v31 }
 0xa00   :  { %v2866_v37 = vpack.c.b16 %v1222_v34, %v1222_v34 }
 0xa03   :  { %v1105_v16 = vpop.permute.xlu2 %1104 }
 0xa04   :  { %v1110_v14 = vsel %vm253_vm4, %v1105_v16, 0 }
 0xa05   :  { %1119 = vmatpush.bf16.xpose.msrb.mxu0 %v1110_v14 }
 0xa0a   :  { %v1058_v17 = vpop.permute.xlu0 %1057 }
 0xa0b   :  { %v1073_v23 = vpack.c.bf16 %v1058_v17, %v1058_v17 }
 0xa0c   :  { %2112 = vmatmul.msk.bf16.vlgmr.msrb.gmra.mxu0 %vm253_vm4, %v1070_v61 }
 0xa0d   :  { %v1174_v29 = vunpack.c.l.b16 %v1073_v23 }
 0xa0f   :  { %v2857_v4 = vpack.c.b16 %v1174_v29, %v1174_v29 }
 0xa12   :  { %v1054_v18 = vpop.permute.xlu1 %1053  ;;  %v1060_v2 = vpop.permute.xlu0 %1059 }
 0xa13   :  { %v1072_v20 = vpack.c.bf16 %v1054_v18, %v1054_v18  ;;  %v1074_v59 = vpack.c.bf16 %v1060_v2, %v1060_v2 }
 0xa15   :  { %v1150_v21 = vunpack.c.l.b16 %v1072_v20  ;;  %v1198_v22 = vunpack.c.l.b16 %v1074_v59 }
 0xa17   :  { %v2849_v24 = vpack.c.b16 %v1150_v21, %v1150_v21  ;;  %v2851_v27 = vpack.c.b16 %v1198_v22, %v1198_v22 }
 0xa19   :  { %1152 = vrot.lane.b32.xlu0 %v2849_v24, %s2480_s3  ;;  %1200 = vrot.lane.b32.xlu1 %v2851_v27, %s2480_s3 }
 0xa1a   :  { %v1066_v60 = vpop.permute.xlu1 %1065 }
 0xa1b   :  { %v1076_v30 = vpack.c.bf16 %v1066_v60, %v1066_v60 }
 0xa1d   :  { %v1246_v5 = vunpack.c.l.b16 %v1076_v30 }
 0xa1f   :  { %v2859_v32 = vpack.c.b16 %v1246_v5, %v1246_v5 }
 0xa21   :  { %1176 = vrot.lane.b32.xlu0 %v2857_v4, %s2480_s3  ;;  %1248 = vrot.lane.b32.xlu2 %v2859_v32, %s2480_s3 }
 0xa22   :  { %v1081_v33 = vpop.permute.xlu1 %1080 }
 0xa23   :  { %v1086_v35 = vsel %vm253_vm4, %v1081_v33, 0 }
 0xa24   :  { %1095 = vmatpush.bf16.xpose.msrb.mxu3 %v1086_v35 }
 0xa29   :  { %1224 = vrot.lane.b32.xlu0 %v2866_v37, %s2480_s3  ;;  %1381 = vrot.lane.b32.xlu2 %v1079_v6, %s2474_s23 }
 0xa2b   :  { %2111 = vmatmul.msk.bf16.vlgmr.msrb.gmra.mxu3 %vm253_vm4, %v1069_v63 }
 0xa6b   :  { %v1129_v43 = vpop.permute.xlu1 %1128 }
 0xa6c   :  { %v1134_v39 = vsel %vm253_vm4, %v1129_v43, 0 }
 0xa6d   :  { %1143 = vmatpush.bf16.xpose.msra.mxu1 %v1134_v39 }
 0xa74   :  { %2113 = vmatmul.msk.bf16.vlgmr.msra.gmra.mxu1 %vm253_vm4, %v1071_v8 }
 0xa7b   :  { %v1249_v40 = vpop.permute.xlu2 %1248 }
 0xa7c   :  { %v1254_v25 = vsel %vm253_vm4, %v1249_v40, 0 }
 0xa83   :  { %v1382_v52 = vpop.permute.xlu2 %1381 }
 0xa84   :  { %v1387_v28 = vsel %vm562_vm6, %v1382_v52, 0 }
 0xa89   :  { %v1121_v41 = vpop.f32.mrf.mxu0 }
 0xa8a   :  { %v1270_v42 = vmul.f32 0.35355338, %v1121_v41 }
 0xa8b   :  { %v1153_v44 = vpop.permute.xlu0 %1152  ;;  %v1201_v38 = vpop.permute.xlu1 %1200 }
 0xa8c   :  { %v1158_v46 = vsel %vm253_vm4, %v1153_v44, 0  ;;  %v1206_v47 = vsel %vm253_vm4, %v1201_v38, 0  ;;  %v2877_v48 = vadd.f32 %v1270_v42, %v2684_v36 }
 0xa8d   :  { %1167 = vmatpush.bf16.xpose.msra.mxu2 %v1158_v46  ;;  %1215 = vmatpush.bf16.xpose.msra.mxu0 %v1206_v47 }
 0xa8e   :  { %v1288_v50 = vsel %vm253_vm4, %v2877_v48, -inf }
 0xa8f   :  { %1289 = vmax.xlane.f32.xlu0 %v1288_v50 }
 0xa91   :  { %v1123_v51 = vpop.f32.mrf.mxu0 }
 0xa93   :  { %v1177_v54 = vpop.permute.xlu0 %1176 }
 0xa94   :  { %v1182_v56 = vsel %vm253_vm4, %v1177_v54, 0  ;;  %2114 = vmatmul.msk.bf16.vlgmr.msra.gmra.mxu2 %vm253_vm4, %v1072_v20  ;;  %2116 = vmatmul.msk.bf16.vlgmr.msra.gmra.mxu0 %vm253_vm4, %v1074_v59 }
 0xa95   :  { %1263 = vmatpush.bf16.xpose.msrb.mxu2 %v1254_v25  ;;  %1191 = vmatpush.bf16.xpose.msra.mxu3 %v1182_v56 }
 0xa9b   :  { %v1225_v57 = vpop.permute.xlu0 %1224 }
 0xa9c   :  { %v1230_v58 = vsel %vm253_vm4, %v1225_v57, 0  ;;  %2115 = vmatmul.msk.bf16.vlgmr.msra.gmra.mxu3 %vm253_vm4, %v1073_v23 }
 0xa9d   :  { %1396 = vmatpush.bf16.msrb.mxu3 %v1387_v28  ;;  %1239 = vmatpush.bf16.xpose.msrb.mxu1 %v1230_v58 }
 0xaa3   :  { %1402 = vrot.lane.b32.xlu0 %v2837_v0, %s2474_s23 }
 0xaa4   :  { %2117 = vmatmul.msk.bf16.vlgmr.msrb.gmra.mxu1 %vm253_vm4, %v1075_v31  ;;  %2118 = vmatmul.msk.bf16.vlgmr.msrb.gmra.mxu2 %vm253_vm4, %v1076_v30 }
 0xaae   :  { %v1097_v45 = vpop.f32.mrf.mxu3 }
 0xaaf   :  { %v1269_v61 = vmul.f32 0.35355338, %v1097_v45 }
 0xab1   :  { %v1277_v62 = vadd.f32 %v1269_v61, %v2672_v19 }
 0xab3   :  { %v1285_v63 = vsel %vm253_vm4, %v1277_v62, -inf }
 0xab4   :  { %1286 = vmax.xlane.f32.xlu2 %v1285_v63 }
 0xab6   :  { %v1099_v3 = vpop.f32.mrf.mxu3 }
 0xaf1   :  { %v1145_v6 = vpop.f32.mrf.mxu1 }
 0xaf2   :  { %v1271_v7 = vmul.f32 0.35355338, %v1145_v6 }
 0xaf4   :  { %v1279_v8 = vadd.f32 %v1271_v7, %v2672_v19 }
 0xaf6   :  { %v1291_v10 = vsel %vm253_vm4, %v1279_v8, -inf }
 0xaf7   :  { %1292 = vmax.xlane.f32.xlu2 %v1291_v10 }
 0xaf9   :  { %v1147_v0 = vpop.f32.mrf.mxu1 }
 0xb02   :  { %v1290_v15 = vpop.xlane.xlu0 %1289 }
 0xb03   :  { %v1310_v51 = vsub.f32 %v2877_v48, %v1290_v15 }
 0xb11   :  { %v1217_v16 = vpop.f32.mrf.mxu0 }
 0xb12   :  { %v1274_v14 = vmul.f32 0.35355338, %v1217_v16 }
 0xb14   :  { %v1282_v17 = vadd.f32 %v1274_v14, %v2684_v36 }
 0xb15   :  { %v1403_v18 = vpop.permute.xlu0 %1402 }
 0xb16   :  { %v1408_v2 = vsel %vm562_vm6, %v1403_v18, 0  ;;  %v1300_v20 = vsel %vm253_vm4, %v1282_v17, -inf }
 0xb17   :  { %1417 = vmatpush.bf16.msrb.mxu0 %v1408_v2  ;;  %v1169_v59 = vpop.f32.mrf.mxu2  ;;  %1301 = vmax.xlane.f32.xlu2 %v1300_v20 }
 0xb18   :  { %v1272_v5 = vmul.f32 0.35355338, %v1169_v59 }
 0xb19   :  { %v1219_v21 = vpop.f32.mrf.mxu0 }
 0xb1a   :  { %v1280_v39 = vadd.f32 %v1272_v5, %v2684_v36 }
 0xb1c   :  { %v1294_v42 = vsel %vm253_vm4, %v1280_v39, -inf }
 0xb1f   :  { %v1171_v22 = vpop.f32.mrf.mxu2  ;;  %v1193_v23 = vpop.f32.mrf.mxu3 }
 0xb20   :  { %v1273_v60 = vmul.f32 0.35355338, %v1193_v23 }
 0xb21   :  { %v1241_v29 = vpop.f32.mrf.mxu1 }
 0xb22   :  { %v1281_v30 = vadd.f32 %v1273_v60, %v2672_v19  ;;  %v1275_v52 = vmul.f32 0.35355338, %v1241_v29 }
 0xb24   :  { %v1297_v31 = vsel %vm253_vm4, %v1281_v30, -inf  ;;  %v1283_v28 = vadd.f32 %v1275_v52, %v2672_v19 }
 0xb25   :  { %1298 = vmax.xlane.f32.xlu1 %v1297_v31 }
 0xb27   :  { %v1265_v33 = vpop.f32.mrf.mxu2  ;;  %v1287_v34 = vpop.xlane.xlu2 %1286 }
 0xb28   :  { %v1309_v35 = vsub.f32 %v1277_v62, %v1287_v34  ;;  %v1195_v43 = vpop.f32.mrf.mxu3  ;;  %v1276_v46 = vmul.f32 0.35355338, %v1265_v33 }
 0xb29   :  { %v1243_v40 = vpop.f32.mrf.mxu1 }
 0xb2a   :  { %v1317_v41 = vmul.f32 1.442695, %v1309_v35  ;;  %v1284_v25 = vadd.f32 %v1276_v46, %v2684_v36 }
 0xb2c   :  { %2316 = vpow2.f32 %v1317_v41  ;;  %v1306_v50 = vsel %vm253_vm4, %v1284_v25, -inf }
 0xb2d   :  { %1295 = vmax.xlane.f32.xlu1 %v1294_v42 }
 0xb2f   :  { %v1267_v44 = vpop.f32.mrf.mxu2  ;;  %1423 = vrot.lane.b32.xlu2 %v2843_v13, %s2474_s23  ;;  %v1319_v13 = vmul.f32 1.442695, %v1310_v51 }
 0xb31   :  { %2318 = vpow2.f32 %v1319_v13 }
 0xb32   :  { %v2317_v38 = vpop.eup %2316 }
 0xb33   :  { %v1333_v47 = vsel %vm253_vm4, %v2317_v38, 0.0 }
 0xb34   :  { %1334 = vadd.xlane.f32.xlu0 %v1333_v47 }
 0xb37   :  { %1465 = vrot.lane.b32.xlu2 %v2857_v4, %s2474_s23  ;;  %v1303_v4 = vsel %vm253_vm4, %v1283_v28, -inf  ;;  %v2915_v36 = vpop.eup %2318 }
 0xb38   :  { %v1336_v48 = vsel %vm253_vm4, %v2915_v36, 0.0 }
 0xb3c   :  { %1307 = vmax.xlane.f32.xlu0 %v1306_v50 }
 0xb46   :  { %1444 = vrot.lane.b32.xlu1 %v2849_v24, %s2474_s23 }
 0xb6a   :  { %v1293_v54 = vpop.xlane.xlu2 %1292 }
 0xb6b   :  { %v1311_v56 = vsub.f32 %v1279_v8, %v1293_v54 }
 0xb6d   :  { %v1321_v57 = vmul.f32 1.442695, %v1311_v56 }
 0xb6f   :  { %2320 = vpow2.f32 %v1321_v57 }
 0xb70   :  { %1304 = vmax.xlane.f32.xlu1 %v1303_v4 }
 0xb75   :  { %v2917_v58 = vpop.eup %2320 }
 0xb76   :  { %v1339_v24 = vsel %vm253_vm4, %v2917_v58, 0.0 }
 0xb77   :  { %1340 = vadd.xlane.f32.xlu0 %v1339_v24 }
 0xb78   :  { %1337 = vadd.xlane.f32.xlu1 %v1336_v48 }
 0xb8a   :  { %v1302_v45 = vpop.xlane.xlu2 %1301 }
 0xb8b   :  { %v1314_v19 = vsub.f32 %v1282_v17, %v1302_v45 }
 0xb8d   :  { %v1327_v61 = vmul.f32 1.442695, %v1314_v19 }
 0xb8f   :  { %2322 = vpow2.f32 %v1327_v61 }
 0xb92   :  { %v1424_v62 = vpop.permute.xlu2 %1423 }
 0xb93   :  { %v1429_v63 = vsel %vm562_vm6, %v1424_v62, 0 }
 0xb94   :  { %1438 = vmatpush.bf16.msra.mxu1 %v1429_v63 }
 0xb95   :  { %v2924_v3 = vpop.eup %2322 }
 0xb96   :  { %v1348_v6 = vsel %vm253_vm4, %v2924_v3, 0.0 }
 0xb97   :  { %1349 = vadd.xlane.f32.xlu2 %v1348_v6 }
 0xb98   :  { %v1299_v7 = vpop.xlane.xlu1 %1298 }
 0xb99   :  { %v1313_v8 = vsub.f32 %v1281_v30, %v1299_v7 }
 0xb9a   :  { %v1466_v10 = vpop.permute.xlu2 %1465 }
 0xb9b   :  { %v1325_v0 = vmul.f32 1.442695, %v1313_v8  ;;  %v1471_v15 = vsel %vm562_vm6, %v1466_v10, 0 }
 0xb9c   :  { %1480 = vmatpush.bf16.msra.mxu3 %v1471_v15 }
 0xb9d   :  { %2324 = vpow2.f32 %v1325_v0 }
 0xba0   :  { %v1296_v16 = vpop.xlane.xlu1 %1295 }
 0xba1   :  { %v1312_v14 = vsub.f32 %v1280_v39, %v1296_v16 }
 0xba3   :  { %v2325_v17 = vpop.eup %2324  ;;  %v1323_v18 = vmul.f32 1.442695, %v1312_v14 }
 0xba4   :  { %v1345_v2 = vsel %vm253_vm4, %v2325_v17, 0.0 }
 0xba5   :  { %2326 = vpow2.f32 %v1323_v18  ;;  %1346 = vadd.xlane.f32.xlu0 %v1345_v2 }
 0xba7   :  { %v1335_v20 = vpop.xlane.xlu0 %1334 }
 0xba8   :  { %2328 = vrcp.f32 %v1335_v20 }
 0xbab   :  { %v2327_v59 = vpop.eup %2326 }
 0xbac   :  { %v1342_v21 = vsel %vm253_vm4, %v2327_v59, 0.0 }
 0xbad   :  { %1343 = vadd.xlane.f32.xlu2 %v1342_v21 }
 0xbae   :  { %v2329_v22 = vpop.eup %2328 }
 0xbaf   :  { %v1365_v23 = vmul.f32 %v2329_v22, %v2317_v38  ;;  %v1308_v60 = vpop.xlane.xlu0 %1307 }
 0xbb0   :  { %v1316_v29 = vsub.f32 %v1284_v25, %v1308_v60 }
 0xbb1   :  { %v1373_v30 = vpack.c.bf16 %v1365_v23, %v1365_v23 }
 0xbb2   :  { %v1331_v5 = vmul.f32 1.442695, %v1316_v29 }
 0xbb3   :  { %2119 = vmatmul.msk.bf16.vlgmr.msrb.gmra.mxu3 %vm253_vm4, %v1373_v30 }
 0xbb4   :  { %2330 = vpow2.f32 %v1331_v5 }
 0xbb8   :  { %v1445_v31 = vpop.permute.xlu1 %1444 }
 0xbb9   :  { %v1450_v33 = vsel %vm562_vm6, %v1445_v31, 0 }
 0xbba   :  { %v2331_v34 = vpop.eup %2330  ;;  %1459 = vmatpush.bf16.msra.mxu2 %v1450_v33 }
 0xbbb   :  { %v1354_v35 = vsel %vm253_vm4, %v2331_v34, 0.0 }
 0xbbc   :  { %1355 = vadd.xlane.f32.xlu1 %v1354_v35 }
 0xbc5   :  { %1507 = vrot.lane.b32.xlu2 %v2866_v37, %s2474_s23 }
 0xbd5   :  { %1528 = vrot.lane.b32.xlu1 %v2859_v32, %s2474_s23 }
 0xbe3   :  { %v1305_v43 = vpop.xlane.xlu1 %1304 }
 0xbe4   :  { %v1315_v39 = vsub.f32 %v1283_v28, %v1305_v43 }
 0xbe6   :  { %v1329_v40 = vmul.f32 1.442695, %v1315_v39 }
 0xbe8   :  { %2332 = vpow2.f32 %v1329_v40  ;;  %v2201_v40 = vld [vmem:[%s3054_s5 + $0x18] sm:$0xff] }
 0xbe9   :  { %1602 = vmatpush.bf16.msrb.mxu3 %v2201_v40 }
 0xbea   :  { %v1341_v41 = vpop.xlane.xlu0 %1340 }
 0xbeb   :  { %2334 = vrcp.f32 %v1341_v41  ;;  %v1338_v42 = vpop.xlane.xlu1 %1337  ;;  %v2200_v41 = vld [vmem:[%s3054_s5 + $0x10] sm:$0xff]  ;;  %s1982_s5 = sshll.u32 %s2487_s22, 4  ;;  %s1983_s5 = int_to_ptr.vmem [resolvable:$true] %s1982_s5 }
 0xbec   :  { %2336 = vrcp.f32 %v1338_v42 }
 0xbed   :  { %1603 = vmatpush.bf16.msrb.mxu3 %v2200_v41 }
 0xbee   :  { %v2333_v44 = vpop.eup %2332 }
 0xbef   :  { %v1351_v38 = vsel %vm253_vm4, %v2333_v44, 0.0 }
 0xbf0   :  { %1352 = vadd.xlane.f32.xlu0 %v1351_v38 }
 0xbf1   :  { %v2335_v46 = vpop.eup %2334 }
 0xbf2   :  { %v2337_v47 = vpop.eup %2336  ;;  %v1367_v25 = vmul.f32 %v2335_v46, %v2917_v58 }
 0xbf3   :  { %v1366_v37 = vmul.f32 %v2337_v47, %v2915_v36 }
 0xbf4   :  { %v1375_v50 = vpack.c.bf16 %v1367_v25, %v1367_v25 }
 0xbf5   :  { %v1374_v32 = vpack.c.bf16 %v1366_v37, %v1366_v37 }
 0xbf6   :  { %2121 = vmatmul.msk.bf16.vlgmr.msra.gmra.mxu1 %vm253_vm4, %v1375_v50 }
 0xbf7   :  { %2120 = vmatmul.msk.bf16.vlgmr.msrb.gmra.mxu0 %vm253_vm4, %v1374_v32 }
 0xc04   :  { %1486 = vrot.lane.b32.xlu0 %v2851_v27, %s2474_s23  ;;  %s1971_s23 = sshll.u32 %s2486_s8, 4  ;;  %s1972_s23 = int_to_ptr.vmem [resolvable:$true] %s1971_s23 }
 0xc0a   :  { %v1350_v51 = vpop.xlane.xlu2 %1349 }
 0xc18   :  { %v1347_v52 = vpop.xlane.xlu0 %1346 }
 0xc19   :  { %2338 = vrcp.f32 %v1347_v52 }
 0xc1f   :  { %v2339_v13 = vpop.eup %2338 }
 0xc20   :  { %v1369_v54 = vmul.f32 %v2339_v13, %v2325_v17  ;;  %v1344_v56 = vpop.xlane.xlu2 %1343 }
 0xc21   :  { %2340 = vrcp.f32 %v1344_v56 }
 0xc22   :  { %v1377_v28 = vpack.c.bf16 %v1369_v54, %v1369_v54 }
 0xc24   :  { %2123 = vmatmul.msk.bf16.vlgmr.msra.gmra.mxu3 %vm253_vm4, %v1377_v28 }
 0xc27   :  { %v2341_v57 = vpop.eup %2340 }
 0xc28   :  { %v1368_v4 = vmul.f32 %v2341_v57, %v2327_v59  ;;  %v1508_v36 = vpop.permute.xlu2 %1507 }
 0xc29   :  { %v1513_v58 = vsel %vm562_vm6, %v1508_v36, 0 }
 0xc2a   :  { %v1376_v24 = vpack.c.bf16 %v1368_v4, %v1368_v4  ;;  %1522 = vmatpush.bf16.msrb.mxu1 %v1513_v58  ;;  %v1580_v4 = vperm.slane %v2829_v55, 1 }
 0xc2c   :  { %2122 = vmatmul.msk.bf16.vlgmr.msra.gmra.mxu2 %vm253_vm4, %v1376_v24 }
 0xc2f   :  { %v1356_v48 = vpop.xlane.xlu1 %1355 }
 0xc30   :  { %2342 = vrcp.f32 %v1356_v48 }
 0xc36   :  { %v1398_v27 = vpop.f32.mrf.mxu3  ;;  %v2343_v19 = vpop.eup %2342 }
 0xc37   :  { %v1372_v61 = vmul.f32 %v2343_v19, %v2331_v34 }
 0xc39   :  { %v1380_v6 = vpack.c.bf16 %v1372_v61, %v1372_v61 }
 0xc3e   :  { %v1400_v45 = vpop.f32.mrf.mxu3 }
 0xc47   :  { %v1529_v62 = vpop.permute.xlu1 %1528 }
 0xc48   :  { %v1534_v63 = vsel %vm562_vm6, %v1529_v62, 0 }
 0xc49   :  { %1543 = vmatpush.bf16.msrb.mxu2 %v1534_v63 }
 0xc4c   :  { %2126 = vmatmul.msk.bf16.vlgmr.msrb.gmra.mxu2 %vm253_vm4, %v1380_v6 }
 0xc63   :  { %v1353_v7 = vpop.xlane.xlu0 %1352 }
 0xc64   :  { %2344 = vrcp.f32 %v1353_v7 }
 0xc65   :  { %2346 = vrcp.f32 %v1350_v51 }
 0xc6a   :  { %v2345_v8 = vpop.eup %2344 }
 0xc6b   :  { %v1371_v10 = vmul.f32 %v2345_v8, %v2333_v44  ;;  %v2347_v15 = vpop.eup %2346 }
 0xc6c   :  { %v1370_v17 = vmul.f32 %v2347_v15, %v2924_v3 }
 0xc6d   :  { %v1379_v0 = vpack.c.bf16 %v1371_v10, %v1371_v10 }
 0xc6e   :  { %v1378_v20 = vpack.c.bf16 %v1370_v17, %v1370_v17 }
 0xc6f   :  { %2125 = vmatmul.msk.bf16.vlgmr.msrb.gmra.mxu1 %vm253_vm4, %v1379_v0 }
 0xc73   :  { %v1440_v16 = vpop.f32.mrf.mxu1 }
 0xc74   :  { %v1419_v14 = vpop.f32.mrf.mxu0 }
 0xc76   :  { %v1487_v18 = vpop.permute.xlu0 %1486 }
 0xc77   :  { %v1492_v2 = vsel %vm562_vm6, %v1487_v18, 0 }
 0xc78   :  { %1501 = vmatpush.bf16.msra.mxu0 %v1492_v2  ;;  %v2202_v2 = vld [vmem:[%s3055_s6 + $0x10] sm:$0xff] }
 0xc7b   :  { %v1442_v59 = vpop.f32.mrf.mxu1  ;;  %2124 = vmatmul.msk.bf16.vlgmr.msra.gmra.mxu0 %vm253_vm4, %v1378_v20 }
 0xc7c   :  { %v1421_v21 = vpop.f32.mrf.mxu0 }
 0xca7   :  { %v1482_v22 = vpop.f32.mrf.mxu3 }
 0xcaf   :  { %v1461_v23 = vpop.f32.mrf.mxu2  ;;  %v1484_v60 = vpop.f32.mrf.mxu3 }
 0xcb0   :  { %v2251_v29 = vpack.i.bf16 %v1461_v23, %v1440_v16 }
 0xcb2   :  { %2252 = vrot.lane.b32.xlu0 %v2251_v29, %s2481_s9 }
 0xcb7   :  { %v1463_v30 = vpop.f32.mrf.mxu2 }
 0xccf   :  { %v1545_v5 = vpop.f32.mrf.mxu2 }
 0xcd7   :  { %v1547_v31 = vpop.f32.mrf.mxu2 }
 0xcec   :  { %v1524_v33 = vpop.f32.mrf.mxu1 }
 0xced   :  { %v2261_v3 = vpack.i.bf16 %v1545_v5, %v1524_v33 }
 0xcef   :  { %2262 = vrot.lane.b32.xlu2 %v2261_v3, %s2483_s26 }
 0xcf4   :  { %v1526_v34 = vpop.f32.mrf.mxu1 }
 0xcf8   :  { %v1503_v35 = vpop.f32.mrf.mxu0 }
 0xcf9   :  { %v2256_v43 = vpack.i.bf16 %v1503_v35, %v1482_v22 }
 0xcfb   :  { %2257 = vrot.lane.b32.xlu1 %v2256_v43, %s2482_s25 }
 0xd00   :  { %v1505_v39 = vpop.f32.mrf.mxu0 }
 0xd01   :  { %v1656_v39 = vperm.slane %v2829_v55, 2 }
 0xd24   :  { %v2253_v42 = vpop.permute.xlu0 %2252 }
 0xd25   :  { %v2255_v44 = vunpack.i.h.bf16 %v2253_v42  ;;  %v2254_v38 = vunpack.i.l.bf16 %v2253_v42 }
 0xd27   :  { %v1573_v50 = vsel %vm253_vm4, %v1398_v27, %v2254_v38  ;;  %v1574_v32 = vsel %vm253_vm4, %v1419_v14, %v2255_v44  ;;  %v1659_v44 = vperm.slane %v2829_v55, 3 }
 0xd49   :  { %v2263_v46 = vpop.permute.xlu2 %2262 }
 0xd4a   :  { %v2265_v51 = vunpack.i.h.bf16 %v2263_v46  ;;  %v2264_v52 = vunpack.i.l.bf16 %v2263_v46 }
 0xd6d   :  { %v2258_v47 = vpop.permute.xlu1 %2257 }
 0xd6e   :  { %v2260_v25 = vunpack.i.h.bf16 %v2258_v47  ;;  %v2259_v37 = vunpack.i.l.bf16 %v2258_v47 }
 0xd70   :  { %v1576_v13 = vsel %vm752_vm7, %v1574_v32, %v2260_v25  ;;  %v1575_v54 = vsel %vm752_vm7, %v1573_v50, %v2259_v37  ;;  %v2207_v32 = vld [vmem:[%s3056_s7 + $0x38] sm:$0xff] }
 0xd71   :  { %v1578_v56 = vsel %vm755_vm8, %v1576_v13, %v2265_v51  ;;  %v1577_v28 = vsel %vm755_vm8, %v1575_v54, %v2264_v52  ;;  %1744 = vmatpush.bf16.msra.mxu1 %v2207_v32  ;;  %v2206_v51 = vld [vmem:[%s3056_s7 + $0x30] sm:$0xff]  ;;  %v2205_v52 = vld [vmem:[%s3056_s7 + $0x28] sm:$0xff]  ;;  %v2204_v13 = vld [vmem:[%s3056_s7 + $0x20] sm:$0xff]  ;;  %v1663_v54 = vperm.slane %v2829_v55, 4 }
 0xd72   :  { %v1579_v57 = vpack.c.bf16 %v1578_v56, %v1577_v28 }
 0xd74   :  { %2135 = vmatmul.msk.bf16.vlgmr.msrb.gmra.mxu3 %vm202_vm3, %v1579_v57 }
 0xd75   :  { %1745 = vmatpush.bf16.msra.mxu1 %v2206_v51 }
 0xd79   :  { %1746 = vmatpush.bf16.msra.mxu1 %v2205_v52 }
 0xd7d   :  { %1747 = vmatpush.bf16.msra.mxu1 %v2204_v13 }
 0xdf7   :  { %v1605_v36 = vpop.f32.mrf.mxu3 }
 0xdf8   :  { %v1606_v58 = vadd.f32 %v1605_v36, %v1580_v4 }
 0xdfa   :  { %v1610_v24 = vadd.f32 %v1606_v58, %v2819_v26 }
 0xdfc   :  { %v1612_v27 = vsel %vm202_vm3, %v1610_v24, 0.0 }
 0xdfd   :  { %1613 = vadd.xlane.f32.xlu0 %v1612_v27 }
 0xdff   :  { %v1607_v48 = vpop.f32.mrf.mxu3 }
 0xe00   :  { %v1608_v45 = vadd.f32 %v1607_v48, %v1580_v4 }
 0xe02   :  { %v1611_v19 = vadd.f32 %v1608_v45, %v2821_v53  ;;  %v2203_v53 = vld [vmem:[%s3055_s6 + $0x18] sm:$0xff] }
 0xe03   :  { %1685 = vmatpush.bf16.msrb.mxu0 %v2203_v53 }
 0xe04   :  { %v1615_v61 = vsel %vm202_vm3, %v1611_v19, 0.0 }
 0xe05   :  { %1616 = vadd.xlane.f32.xlu1 %v1615_v61 }
 0xe07   :  { %1686 = vmatpush.bf16.msrb.mxu0 %v2202_v2 }
 0xe70   :  { %v1614_v62 = vpop.xlane.xlu0 %1613 }
 0xe71   :  { %v1618_v63 = vmul.f32 %v1614_v62, %v2771_v49 }
 0xe73   :  { %v1620_v6 = vsub.f32 %v1610_v24, %v1618_v63 }
 0xe75   :  { %v1622_v7 = vmul.f32 %v1620_v6, %v1620_v6 }
 0xe77   :  { %v1624_v8 = vsel %vm202_vm3, %v1622_v7, 0.0 }
 0xe78   :  { %v1617_v10 = vpop.xlane.xlu1 %1616  ;;  %1625 = vadd.xlane.f32.xlu2 %v1624_v8 }
 0xe79   :  { %v1619_v26 = vmul.f32 %v1617_v10, %v2771_v49 }
 0xe7b   :  { %v1621_v0 = vsub.f32 %v1611_v19, %v1619_v26 }
 0xe7d   :  { %v1623_v15 = vmul.f32 %v1621_v0, %v1621_v0 }
 0xe7f   :  { %v1627_v16 = vsel %vm202_vm3, %v1623_v15, 0.0 }
 0xe80   :  { %1628 = vadd.xlane.f32.xlu0 %v1627_v16 }
 0xeeb   :  { %v1626_v14 = vpop.xlane.xlu2 %1625 }
 0xeec   :  { %v1630_v17 = vmul.f32 %v1626_v14, %v2771_v49  ;;  %v1712_v14 = vperm.slane %v2829_v55, 5 }
 0xeee   :  { %v1632_v18 = vadd.f32 1e-05, %v1630_v17 }
 0xef0   :  { %2348 = vrsqrt.f32 %v1632_v18  ;;  %vm1640_vm6 = vweird.f32 %v1632_v18 }
 0xef3   :  { %v1629_v20 = vpop.xlane.xlu0 %1628 }
 0xef4   :  { %v1631_v59 = vmul.f32 %v1629_v20, %v2771_v49 }
 0xef6   :  { %v2349_v21 = vpop.eup %2348  ;;  %v1633_v22 = vadd.f32 1e-05, %v1631_v59 }
 0xef7   :  { %v1635_v23 = vmul.f32 %v2349_v21, %v1632_v18  ;;  %vm1641_vm4 = vweird.f32 %v2349_v21 }
 0xef8   :  { %2350 = vrsqrt.f32 %v1633_v22  ;;  %vm1642_vm8 = vmor %vm1640_vm6, %vm1641_vm4  ;;  %vm1650_vm13 = vweird.f32 %v1633_v22 }
 0xef9   :  { %v1636_v60 = vmul.f32 %v2349_v21, %v1635_v23 }
 0xefb   :  { %v1637_v29 = vmul.f32 0.5, %v1636_v60  ;;  %v1807_v60 = vsel %vm1806_vm15, %v2665_v12, 0.0  ;;  %vm1964_vm15 = vcmask 0  }
 0xefd   :  { %v1638_v30 = vsub.f32 1.5, %v1637_v29 }
 0xefe   :  { %v2351_v5 = vpop.eup %2350 }
 0xeff   :  { %v1639_v31 = vmul.f32 %v2349_v21, %v1638_v30  ;;  %v1645_v33 = vmul.f32 %v2351_v5, %v1633_v22  ;;  %vm1651_vm12 = vweird.f32 %v2351_v5 }
 0xf00   :  { %vm1652_vm14 = vmor %vm1650_vm13, %vm1651_vm12 }
 0xf01   :  { %v1646_v3 = vmul.f32 %v2351_v5, %v1645_v33  ;;  %v1643_v34 = vsel %vm1642_vm8, %v2349_v21, %v1639_v31 }
 0xf02   :  { %v1654_v40 = vmul.f32 %v1643_v34, %v1620_v6 }
 0xf03   :  { %v1647_v35 = vmul.f32 0.5, %v1646_v3 }
 0xf04   :  { %v1657_v38 = vmul.f32 %v1656_v39, %v1654_v40 }
 0xf05   :  { %v1648_v43 = vsub.f32 1.5, %v1647_v35 }
 0xf06   :  { %v1660_v25 = vadd.f32 %v1659_v44, %v1657_v38 }
 0xf07   :  { %v1649_v41 = vmul.f32 %v2351_v5, %v1648_v43 }
 0xf09   :  { %v1653_v42 = vsel %vm1652_vm14, %v2351_v5, %v1649_v41 }
 0xf0a   :  { %v1655_v46 = vmul.f32 %v1653_v42, %v1621_v0 }
 0xf0c   :  { %v1658_v47 = vmul.f32 %v1656_v39, %v1655_v46  ;;  %v2209_v46 = vld [vmem:[#allocation5 + $0x8] sm:$0xff] }
 0xf0d   :  { %1869 = vmatpush.bf16.msra.mxu3 %v2209_v46 }
 0xf0e   :  { %v1661_v37 = vadd.f32 %v1659_v44, %v1658_v47 }
 0xf10   :  { %v1662_v50 = vpack.c.bf16 %v1661_v37, %v1660_v25 }
 0xf12   :  { %2144 = vmatmul.msk.bf16.vlgmr.msrb.gmra.mxu0 %vm202_vm3, %v1662_v50 }
 0xf8f   :  { %v1688_v56 = vpop.f32.mrf.mxu0 }
 0xf90   :  { %v1689_v28 = vadd.f32 %v1688_v56, %v1663_v54 }
 0xf92   :  { %v1695_v57 = vmul.f32 0.044715, %v1689_v28  ;;  %v1693_v10 = vmul.f32 0.5, %v1689_v28 }
 0xf94   :  { %v1697_v4 = vmul.f32 %v1695_v57, %v1689_v28 }
 0xf96   :  { %v1699_v36 = vmul.f32 %v1697_v4, %v1689_v28 }
 0xf97   :  { %v1690_v58 = vpop.f32.mrf.mxu0 }
 0xf98   :  { %v1701_v24 = vadd.f32 %v1699_v36, %v1689_v28  ;;  %v1691_v27 = vadd.f32 %v1690_v58, %v1663_v54 }
 0xf9a   :  { %v1696_v48 = vmul.f32 0.044715, %v1691_v27  ;;  %v1703_v45 = vmul.f32 0.7978846, %v1701_v24  ;;  %v1694_v26 = vmul.f32 0.5, %v1691_v27 }
 0xf9c   :  { %v1698_v19 = vmul.f32 %v1696_v48, %v1691_v27  ;;  %2352 = vtanh.f32 %v1703_v45 }
 0xf9e   :  { %v1700_v61 = vmul.f32 %v1698_v19, %v1691_v27 }
 0xfa0   :  { %v1702_v62 = vadd.f32 %v1700_v61, %v1691_v27  ;;  %v1816_v27 = vmul.u32 8, %v2571_v1  ;;  %v1800_v61 = vperm.slane %v2829_v55, 6 }
 0xfa2   :  { %v1704_v63 = vmul.f32 0.7978846, %v1702_v62  ;;  %v2353_v6 = vpop.eup %2352 }
 0xfa3   :  { %v1707_v7 = vadd.f32 1.0, %v2353_v6 }
 0xfa4   :  { %2354 = vtanh.f32 %v1704_v63 }
 0xfa5   :  { %v1709_v15 = vmul.f32 %v1707_v7, %v1693_v10  ;;  %v1803_v10 = vperm.slane %v2829_v55, 7  ;;  %v2211_v55 = vld [vmem:[%s3060_s11 + $0x8] sm:$0xff] }
 0xfa6   :  { %1907 = vmatpush.bf16.msra.mxu0 %v2211_v55 }
 0xfaa   :  { %v2355_v8 = vpop.eup %2354 }
 0xfab   :  { %v1708_v0 = vadd.f32 1.0, %v2355_v8 }
 0xfad   :  { %v1710_v16 = vmul.f32 %v1708_v0, %v1694_v26 }
 0xfaf   :  { %v1711_v53 = vpack.c.bf16 %v1710_v16, %v1709_v15 }
 0xfb1   :  { %2161 = vmatmul.msk.bf16.vlgmr.msra.gmra.mxu1 %vm145_vm2, %v1711_v53 }
0x102e   :  { %v1749_v17 = vpop.f32.mrf.mxu1 }
0x102f   :  { %v1750_v18 = vadd.f32 %v1749_v17, %v1712_v14 }
0x1031   :  { %v1754_v2 = vadd.f32 %v1750_v18, %v1660_v25 }
0x1033   :  { %v1756_v20 = vsel %vm202_vm3, %v1754_v2, 0.0 }
0x1034   :  { %1757 = vadd.xlane.f32.xlu1 %v1756_v20  ;;  %v2210_v20 = vld [vmem:[%s3060_s11] sm:$0xff] }
0x1035   :  { %1908 = vmatpush.bf16.msra.mxu0 %v2210_v20 }
0x1036   :  { %v1751_v59 = vpop.f32.mrf.mxu1 }
0x1037   :  { %v1752_v21 = vadd.f32 %v1751_v59, %v1712_v14  ;;  %v2208_v14 = vld [vmem:[#allocation5] sm:$0xff]  ;;  %v2268_v59 = vld [vmem:[%s3059_s10] ss:$0 sm:$0xff] }
0x1038   :  { %1870 = vmatpush.bf16.msra.mxu3 %v2208_v14 }
0x1039   :  { %v1755_v22 = vadd.f32 %v1752_v21, %v1661_v37 }
0x103b   :  { %v1759_v23 = vsel %vm202_vm3, %v1755_v22, 0.0 }
0x103c   :  { %1760 = vadd.xlane.f32.xlu2 %v1759_v23 }
0x1044   :  { %1808 = vadd.xlane.f32.xlu2 %v1807_v60 }
0x10a7   :  { %v1758_v29 = vpop.xlane.xlu1 %1757 }
0x10a8   :  { %v1762_v30 = vmul.f32 %v1758_v29, %v2771_v49 }
0x10aa   :  { %v1764_v5 = vsub.f32 %v1754_v2, %v1762_v30  ;;  %v2269_v30 = vld [vmem:[%s3061_s12] ss:$0 sm:$0xff] }
0x10ac   :  { %v1766_v31 = vmul.f32 %v1764_v5, %v1764_v5 }
0x10ae   :  { %v1768_v33 = vsel %vm202_vm3, %v1766_v31, 0.0 }
0x10af   :  { %v1761_v3 = vpop.xlane.xlu2 %1760  ;;  %1769 = vadd.xlane.f32.xlu0 %v1768_v33 }
0x10b0   :  { %v1763_v34 = vmul.f32 %v1761_v3, %v2771_v49 }
0x10b2   :  { %v1765_v35 = vsub.f32 %v1755_v22, %v1763_v34  ;;  %v1943_v34 = vld [vmem:[%s3050_s1] sm:$0x3] }
0x10b4   :  { %v1767_v43 = vmul.f32 %v1765_v35, %v1765_v35 }
0x10b6   :  { %v1771_v39 = vsel %vm202_vm3, %v1767_v43, 0.0 }
0x10b7   :  { %1772 = vadd.xlane.f32.xlu1 %v1771_v39  ;;  %v1809_v38 = vpop.xlane.xlu2 %1808 }
0x10b8   :  { %v2162_v50 = vadd.f32 -1.0, %v1809_v38  ;;  %vm1810_vm2 = vcmp.gt.f32.partialorder %v1809_v38, 0.0 }
0x10ba   :  { %v1812_v52 = vsel %vm1810_vm2, %v2162_v50, 7.0 }
0x10bb   :  { %v2213_v56 = vceil.f32 %v1812_v52  ;;  %v2214_v28 = vfloor.f32 %v1812_v52  ;;  %vm2212_vm1 = vcmp.lt.s32.totalorder %v1812_v52, 0 }
0x10bd   :  { %v2215_v36 = vsel %vm2212_vm1, %v2213_v56, %v2214_v28 }
0x10be   :  { %v2216_v45 = vcvt.f32.s32 %v2215_v36 }
0x10c0   :  { %v1817_v6 = vadd.s32 %v2216_v45, %v1816_v27 }
0x10c2   :  { %vm1818_vm6 = vcmp.eq.s32.totalorder %v2593_v9, %v1817_v6 }
0x10c3   :  { %v2163_v16 = vsel %vm1818_vm6, 1.0, %v2476_v11 }
0x10c4   :  { %v1821_v53 = vpack.c.bf16 %v2163_v16, %v2163_v16 }
0x1122   :  { %v1770_v40 = vpop.xlane.xlu0 %1769 }
0x1123   :  { %v1774_v12 = vmul.f32 %v1770_v40, %v2771_v49 }
0x1125   :  { %v1776_v41 = vadd.f32 1e-05, %v1774_v12 }
0x1127   :  { %2356 = vrsqrt.f32 %v1776_v41  ;;  %vm1784_vm5 = vweird.f32 %v1776_v41 }
0x112a   :  { %v1773_v42 = vpop.xlane.xlu1 %1772 }
0x112b   :  { %v1775_v44 = vmul.f32 %v1773_v42, %v2771_v49 }
0x112d   :  { %v2357_v47 = vpop.eup %2356  ;;  %v1777_v25 = vadd.f32 1e-05, %v1775_v44 }
0x112e   :  { %v1779_v37 = vmul.f32 %v2357_v47, %v1776_v41  ;;  %vm1785_vm0 = vweird.f32 %v2357_v47 }
0x112f   :  { %2358 = vrsqrt.f32 %v1777_v25  ;;  %vm1786_vm9 = vmor %vm1784_vm5, %vm1785_vm0  ;;  %vm1794_vm11 = vweird.f32 %v1777_v25 }
0x1130   :  { %v1780_v32 = vmul.f32 %v2357_v47, %v1779_v37 }
0x1132   :  { %v1781_v51 = vmul.f32 0.5, %v1780_v32 }
0x1134   :  { %v1782_v13 = vsub.f32 1.5, %v1781_v51 }
0x1135   :  { %v2359_v54 = vpop.eup %2358 }
0x1136   :  { %v1783_v57 = vmul.f32 %v2357_v47, %v1782_v13  ;;  %v1789_v4 = vmul.f32 %v2359_v54, %v1777_v25  ;;  %vm1795_vm10 = vweird.f32 %v2359_v54 }
0x1137   :  { %vm1796_vm4 = vmor %vm1794_vm11, %vm1795_vm10 }
0x1138   :  { %v1790_v49 = vmul.f32 %v2359_v54, %v1789_v4  ;;  %v1787_v58 = vsel %vm1786_vm9, %v2357_v47, %v1783_v57 }
0x1139   :  { %v1798_v19 = vmul.f32 %v1787_v58, %v1764_v5 }
0x113a   :  { %v1791_v24 = vmul.f32 0.5, %v1790_v49 }
0x113b   :  { %v1801_v8 = vmul.f32 %v1800_v61, %v1798_v19 }
0x113c   :  { %v1792_v48 = vsub.f32 1.5, %v1791_v24 }
0x113d   :  { %v1804_v0 = vadd.f32 %v1803_v10, %v1801_v8 }
0x113e   :  { %v1793_v62 = vmul.f32 %v2359_v54, %v1792_v48 }
0x1140   :  { %v1797_v63 = vsel %vm1796_vm4, %v2359_v54, %v1793_v62 }
0x1141   :  { %v1799_v7 = vmul.f32 %v1797_v63, %v1765_v35  ;;  %v2485_v35 = vmov 0  }
0x1142   :  { %2266 = vset.pattern.permute.xlu2 %v2485_v35  ;;  %2267 = vset.pattern.permute.xlu0 %v2485_v35 }
0x1143   :  { %v1802_v26 = vmul.f32 %v1800_v61, %v1799_v7  ;;  %1945 = vperm.xlu2 %2266, %v1943_v34  }
0x1145   :  { %v1805_v1 = vadd.f32 %v1803_v10, %v1802_v26 }
0x1147   :  { %v1822_v15 = vpack.c.bf16 %v1805_v1, %v1804_v0 }
0x1149   :  { %1833 = vmatpush.bf16.msra.mxu2 %v1822_v15 }
0x114c   :  { %2164 = vmatmul.msk.bf16.vlgmr.msra.gmra.mxu2 %vm752_vm7, %v1821_v53  ;;  %vm1914_vm7 = vcmask 9216  }
0x119d   :  { %v1946_v44 = vpop.permute.xlu2 %1945 }
0x11cf   :  { %v1835_v17 = vpop.f32.mrf.mxu2 }
0x11d0   :  { %v1839_v18 = vpack.c.bf16 %v1835_v17, %v1835_v17 }
0x11d2   :  { %2173 = vmatmul.msk.bf16.vlgmr.msra.gmra.mxu3 %vm202_vm3, %v1839_v18 }
0x11d7   :  { %v1837_v2 = vpop.f32.mrf.mxu2 }
0x1255   :  { %v1872_v21 = vpop.f32.mrf.mxu3 }
0x1256   :  { %v1873_v22 = vadd.f32 %v2268_v59, %v1872_v21 }
0x1258   :  { %2360 = vtanh.f32 %v1873_v22 }
0x125d   :  { %v1874_v23 = vpop.f32.mrf.mxu3 }
0x125e   :  { %v2361_v60 = vpop.eup %2360 }
0x125f   :  { %v1877_v29 = vpack.c.bf16 %v2361_v60, %v2361_v60 }
0x1261   :  { %2182 = vmatmul.msk.bf16.vlgmr.msra.gmra.mxu0 %vm202_vm3, %v1877_v29  ;;  %vm1947_vm3 = vcmp.eq.s32.totalorder %v2593_v9, %v1946_v44 }
0x1262   :  { %v2183_v50 = vsel %vm1947_vm3, 1.0, %v2476_v11 }
0x12de   :  { %v1910_v5 = vpop.f32.mrf.mxu0 }
0x12df   :  { %v1911_v31 = vadd.f32 %v2269_v30, %v1910_v5 }
0x12e1   :  { %v1915_v33 = vsel %vm1914_vm7, %v1911_v31, -inf }
0x12e2   :  { %1916 = vmax.xlane.f32.xlu0 %v1915_v33 }
0x12e6   :  { %v1912_v3 = vpop.f32.mrf.mxu0 }
0x1355   :  { %v1917_v43 = vpop.xlane.xlu0 %1916 }
0x1356   :  { %v1918_v39 = vsub.f32 %v1911_v31, %v1917_v43 }
0x1358   :  { %v1919_v40 = vmul.f32 1.442695, %v1918_v39 }
0x135a   :  { %2362 = vpow2.f32 %v1919_v40 }
0x1360   :  { %v2363_v12 = vpop.eup %2362 }
0x1361   :  { %v1921_v41 = vsel %vm1914_vm7, %v2363_v12, 0.0 }
0x1362   :  { %1922 = vadd.xlane.f32.xlu1 %v1921_v41 }
0x13d5   :  { %v1923_v42 = vpop.xlane.xlu1 %1922 }
0x13d6   :  { %2364 = vrcp.f32 %v1923_v42  ;;  %v1935_v32 = vand.u32 2147483648, %v1923_v42  ;;  %v1933_v13 = vand.u32 2147483647, %v1923_v42  ;;  %vm1929_vm12 = vweird.f32 %v1923_v42 }
0x13d7   :  { %2366 = vlog2.f32 %v1923_v42 }
0x13d8   :  { %v1936_v28 = vor.u32 1.1754944e-38, %v1935_v32  ;;  %vm1934_vm14 = vcmp.eq.f32.partialorder %v1933_v13, 8.507059e+37 }
0x13dc   :  { %v2365_v38 = vpop.eup %2364 }
0x13dd   :  { %v2367_v46 = vpop.eup %2366  ;;  %v1925_v47 = vmul.f32 %v2365_v38, %v1923_v42  ;;  %vm1930_vm8 = vweird.f32 %v2365_v38 }
0x13de   :  { %v1941_v25 = vmul.f32 0.6931472, %v2367_v46  ;;  %vm1931_vm13 = vmor %vm1929_vm12, %vm1930_vm8 }
0x13df   :  { %v1926_v37 = vsub.f32 1.0, %v1925_v47 }
0x13e0   :  { %v1942_v51 = vsub.f32 %v1918_v39, %v1941_v25 }
0x13e1   :  { %v1927_v52 = vmul.f32 %v2365_v38, %v1926_v37 }
0x13e2   :  { %v1950_v54 = vmul.f32 %v2183_v50, %v1942_v51 }
0x13e3   :  { %v1928_v56 = vadd.f32 %v2365_v38, %v1927_v52 }
0x13e4   :  { %v1951_v57 = vsel %vm1914_vm7, %v1950_v54, 0.0 }
0x13e5   :  { %1952 = vadd.xlane.f32.xlu0 %v1951_v57  ;;  %v1932_v9 = vsel %vm1931_vm13, %v2365_v38, %v1928_v56 }
0x13e6   :  { %v1937_v4 = vsel %vm1934_vm14, %v1936_v28, %v1932_v9 }
0x13e7   :  { %v1938_v49 = vmul.f32 %v2363_v12, %v1937_v4 }
0x13e9   :  { %1939 = vst.msk [vmem:[#allocation7] sm:$0x3] %vm1914_vm7, %v1938_v49 }
0x13ea   :  { %1976 = dma.vmem_to_hbm [thread:$0]  %s1972_s23, 32, %s1974_s17, [#allocation4]  }
0x1458   :  { %v1953_v11 = vpop.xlane.xlu0 %1952 }
0x1459   :  { %v1954_v36 = vrot.slane %v1953_v11, 4 }
0x145b   :  { %v1955_v58 = vadd.f32 %v1954_v36, %v1953_v11 }
0x145d   :  { %v1956_v24 = vrot.slane %v1955_v58, 2 }
0x145f   :  { %v1957_v27 = vadd.f32 %v1956_v24, %v1955_v58 }
0x1461   :  { %v1958_v48 = vrot.slane %v1957_v27, 1 }
0x1463   :  { %v1959_v45 = vadd.f32 %v1958_v48, %v1957_v27 }
0x1465   :  { %2217 = vpush %v1959_v45 }
0x1496   :  { %s2218_s21 = spop %2217 }
0x1497   :  { %v1961_v19 = vstv %s2218_s21 }
0x1498   :  { %v1962_v61 = vsub.f32 0.0, %v1961_v19 }
0x149a   :  { %v1963_v62 = vmul.f32 0.5, %v1962_v61 }
0x149c   :  { %1965 = vst.msk [vmem:[#allocation8] sm:$0x1] %vm1964_vm15, %v1963_v62 }
0x149d   :  { %1987 = dma.vmem_to_hbm [thread:$0]  %s1983_s5, 16, %s1985_s13, [#allocation9]  }
0x149e   :  { %2468 = dma.done.wait [#allocation4], 32  }
0x149f   :  { %2469 = vsyncadd [#allocation4], 4294967264 }
0x14a0   :  { %2470 = dma.done.wait [#allocation9], 16  }
0x14a1   :  { %2471 = vsyncadd [#allocation9], 4294967280 }
0x14a2   :  { %1996 = vsyncpa [#allocation3], 1 }
0x14a3   :  { %1997 = vsyncpa [#allocation6], 1 }
0x14a4   :  { %1998 = vsyncpa [#allocation4], 1 }
0x14a5   :  { %1999 = vsyncpa [#allocation9], 1 }

</bundles_post_ra>
